<compile_context>
chip_gen: v6e
topology: v6e:2x2x1
jax: 0.10.0
libtpu: 0.0.40
codegen_flags: <defaults>
</compile_context>

<pallas_src>
import functools

import jax
import jax.numpy as jnp
from jax.experimental import pallas as pl
from jax.experimental.pallas import tpu as pltpu


# ----------------------------- Pallas kernel -------------------------------


def link_multi_kernel(adj_ref, w0_ref, hidw_ref, vecs_ref, wlast_ref, blast_ref,
                      hid_ref, logit_ref, acc_ref, *, num_hidden):
    """One (row-tile, K-tile) grid step of the fused LINK_multi forward.

    adj_ref   [TILE_N, TILE_K]            bf16 0/1 adjacency tile
    w0_ref    [TILE_K, H]                 bf16 layer-0 weight K-slice
    hidw_ref  [max(1, num_hidden-1),H,H]  bf16 hidden weights (resident constants)
    vecs_ref  [3*num_hidden, H]           f32: per hidden layer (bias, bn_scale, bn_shift)
    wlast_ref [H, OUT_PAD] bf16 ; blast_ref [1, OUT_PAD] f32
    hid_ref   [TILE_N, H]       f32 output (the returned "A")
    logit_ref [TILE_N, OUT_PAD] f32 output (lane-dense, sliced on the host)
    acc_ref   [TILE_N, H]       f32 VMEM scratch: layer-0 accumulator over K tiles
    """
    k = pl.program_id(1)

    @pl.when(k == 0)
    def _():
        acc_ref[...] = jnp.zeros_like(acc_ref)

    # Layer-0 partial product: bf16 x bf16 straight into the MXU, f32 accumulate.
    acc_ref[...] += jnp.dot(adj_ref[...], w0_ref[...],
                            preferred_element_type=jnp.float32)

    @pl.when(k == pl.num_programs(1) - 1)
    def _():
        # Layer-0 epilogue: bias + ReLU + folded eval-mode BatchNorm (scale/shift).
        x = acc_ref[...] + vecs_ref[0:1, :]
        x = jnp.maximum(x, 0.0)
        x = x * vecs_ref[1:2, :] + vecs_ref[2:3, :]

        # Remaining hidden layers (weights resident in VMEM, bf16 on the MXU).
        for l in range(1, num_hidden):
            x = jnp.dot(x.astype(jnp.bfloat16), hidw_ref[l - 1],
                        preferred_element_type=jnp.float32)
            x = x + vecs_ref[3 * l:3 * l + 1, :]
            x = jnp.maximum(x, 0.0)
            x = (x * vecs_ref[3 * l + 1:3 * l + 2, :]
                 + vecs_ref[3 * l + 2:3 * l + 3, :])
            # dropout: identity in eval mode.

        hid_ref[...] = x                                         # returned "A"
        logit_ref[...] = (jnp.dot(x.astype(jnp.bfloat16), wlast_ref[...],
                                  preferred_element_type=jnp.float32)
                          + blast_ref[...])


# ------------------------------ JAX wrapper ---------------------------------


def link_multi_forward(adj, weights, biases, bn_params, *,
                       tile_n=512, tile_k=1024, eps=1e-5):
    """Fused forward of LINK_multi (eval mode).

    adj:       [N, num_nodes] 0/1 adjacency (pass bf16 to avoid any HBM copy).
    weights:   num_layers matrices, each [in_dim, out_dim] (transposed vs PyTorch).
    biases:    num_layers vectors, each [out_dim].
    bn_params: (gamma, beta, running_mean, running_var) per hidden layer.
    Returns (A_hidden [N, hidden], logits [N, out_channels]), both f32.
    """
    num_layers = len(weights)
    assert num_layers >= 2, "num_layers == 1 path not implemented"
    num_hidden = num_layers - 1
    assert len(bn_params) == num_hidden and len(biases) == num_layers

    n, num_nodes = adj.shape
    hidden = weights[0].shape[1]
    out_ch = weights[-1].shape[1]
    out_pad = pl.cdiv(out_ch, 128) * 128              # lane-dense logits slab

    # ---- tile / padding choices (pad only when unavoidable) -----------------
    if n <= tile_n:
        tile_n = n                                     # full-dim block, no padding
    else:
        tile_n = pl.cdiv(tile_n, 8) * 8
    n_pad = pl.cdiv(n, tile_n) * tile_n

    if num_nodes <= tile_k:
        tile_k = num_nodes                             # single K tile, full-dim block
    else:
        tile_k = pl.cdiv(tile_k, 128) * 128
    k_pad = pl.cdiv(num_nodes, tile_k) * tile_k

    # Adjacency stays bf16 (0/1 exact); only copy if dtype/shape force it.
    adj_b = adj if adj.dtype == jnp.bfloat16 else adj.astype(jnp.bfloat16)
    if (n_pad, k_pad) != (n, num_nodes):
        adj_b = jnp.pad(adj_b, ((0, n_pad - n), (0, k_pad - num_nodes)))

    # Layer-0 weight: bf16, rows zero-padded to k_pad (zeros contribute nothing).
    w0 = weights[0].astype(jnp.bfloat16)
    if k_pad != num_nodes:
        w0 = jnp.pad(w0, ((0, k_pad - num_nodes), (0, 0)))

    # Hidden-layer weights stacked (bf16); dummy entry when there is only one
    # hidden layer (never read in that case).
    if num_hidden > 1:
        hidw = jnp.stack([w.astype(jnp.bfloat16) for w in weights[1:num_hidden]])
    else:
        hidw = jnp.zeros((1, hidden, hidden), jnp.bfloat16)

    # Per hidden layer: bias + eval-BatchNorm folded into (scale, shift).
    rows = []
    for l in range(num_hidden):
        g, be, m, v = bn_params[l]
        scale = g.astype(jnp.float32) * jax.lax.rsqrt(v.astype(jnp.float32) + eps)
        shift = be.astype(jnp.float32) - m.astype(jnp.float32) * scale
        rows += [biases[l].astype(jnp.float32), scale, shift]
    vecs = jnp.stack(rows)                             # [3*num_hidden, hidden] f32

    # Last layer, columns zero-padded to the lane-dense width.
    w_last = jnp.pad(weights[-1].astype(jnp.bfloat16), ((0, 0), (0, out_pad - out_ch)))
    b_last = jnp.pad(biases[-1].astype(jnp.float32).reshape(1, -1),
                     ((0, 0), (0, out_pad - out_ch)))

    grid = (n_pad // tile_n, k_pad // tile_k)

    def const(a):
        return pl.BlockSpec(a.shape, lambda i, k: (0,) * a.ndim)

    in_specs = [
        pl.BlockSpec((tile_n, tile_k), lambda i, k: (i, k)),      # adjacency tile
        pl.BlockSpec((tile_k, hidden), lambda i, k: (k, 0)),      # W0 K-slice
        const(hidw), const(vecs), const(w_last), const(b_last),
    ]
    out_specs = (pl.BlockSpec((tile_n, hidden), lambda i, k: (i, 0)),
                 pl.BlockSpec((tile_n, out_pad), lambda i, k: (i, 0)))

    kernel = functools.partial(link_multi_kernel, num_hidden=num_hidden)
    hid_p, logit_p = pl.pallas_call(
        kernel,
        grid=grid,
        in_specs=in_specs,
        out_specs=out_specs,
        out_shape=(jax.ShapeDtypeStruct((n_pad, hidden), jnp.float32),
                   jax.ShapeDtypeStruct((n_pad, out_pad), jnp.float32)),
        scratch_shapes=[pltpu.VMEM((tile_n, hidden), jnp.float32)],
        compiler_params=pltpu.CompilerParams(
            dimension_semantics=("parallel", "arbitrary"),   # rows megacore-shardable
            vmem_limit_bytes=48 * 1024 * 1024),              # safe on v7x's 64 MiB
    )(adj_b, w0, hidw, vecs, w_last, b_last)

    return hid_p[:n], logit_p[:n, :out_ch]


# --------------------------------- main --------------------------------------


if __name__ == "__main__":
    NUM_NODES = 1024        # nodes == input feature dim of the first Linear
    HIDDEN = 128            # lane-dense hidden width
    OUT_CH = 16
    NUM_LAYERS = 3
    EDGE_P = 0.01

    key = jax.random.PRNGKey(0)
    keys = list(jax.random.split(key, 32))

    # Dense 0/1 adjacency, built directly in bf16 (0/1 exact -> kernel-ready, no copy).
    adj = (jax.random.uniform(keys[0], (NUM_NODES, NUM_NODES)) < EDGE_P
           ).astype(jnp.bfloat16)

    def init_w(k, fan_in, fan_out):
        bound = 1.0 / (fan_in ** 0.5)
        return jax.random.uniform(k, (fan_in, fan_out), jnp.float32, -bound, bound)

    dims = [NUM_NODES] + [HIDDEN] * (NUM_LAYERS - 1) + [OUT_CH]
    weights, biases = [], []
    ki = 1
    for l in range(NUM_LAYERS):
        weights.append(init_w(keys[ki], dims[l], dims[l + 1])); ki += 1
        bound = 1.0 / (dims[l] ** 0.5)
        biases.append(jax.random.uniform(keys[ki], (dims[l + 1],), jnp.float32,
                                         -bound, bound)); ki += 1

    bn_params = []
    for l in range(NUM_LAYERS - 1):
        gamma = 1.0 + 0.1 * jax.random.normal(keys[ki], (HIDDEN,)); ki += 1
        beta = 0.1 * jax.random.normal(keys[ki], (HIDDEN,)); ki += 1
        mean = 0.1 * jax.random.normal(keys[ki], (HIDDEN,)); ki += 1
        var = 0.5 + jax.random.uniform(keys[ki], (HIDDEN,), jnp.float32); ki += 1
        bn_params.append((gamma, beta, mean, var))

    # tile_n=256 / tile_k=512 -> grid (4, 2): exercises both row tiling and K tiling.
    hid, logits = link_multi_forward(adj, weights, biases, bn_params,
                                     tile_n=256, tile_k=512)
    hid, logits = jax.block_until_ready((hid, logits))

    # Pure-JAX f32 reference (eval-mode semantics of LINK_multi.forward).
    x = adj.astype(jnp.float32)
    for l in range(NUM_LAYERS - 1):
        x = x @ weights[l] + biases[l]
        x = jnp.maximum(x, 0.0)
        g, be, m, v = bn_params[l]
        x = (x - m) / jnp.sqrt(v + 1e-5) * g + be
    hid_ref, logits_ref = x, x @ weights[-1] + biases[-1]

    assert hid.shape == (NUM_NODES, HIDDEN) and logits.shape == (NUM_NODES, OUT_CH)
    assert bool(jnp.all(jnp.isfinite(hid))) and bool(jnp.all(jnp.isfinite(logits)))
    err_h = float(jnp.max(jnp.abs(hid - hid_ref)))
    err_l = float(jnp.max(jnp.abs(logits - logits_ref)))
    assert err_h < 5e-2 and err_l < 5e-2, (err_h, err_l)
    print("KERNEL_OK")
</pallas_src>

<mosaic_0001>
module attributes {stable_mosaic.version = 11 : i64} {
  func.func @link_multi_kernel(%arg0: i32, %arg1: i32, %arg2: memref<256x512xbf16, #tpu.memory_space<vmem>>, %arg3: memref<512x128xbf16, #tpu.memory_space<vmem>>, %arg4: memref<1x128x128xbf16, #tpu.memory_space<vmem>>, %arg5: memref<6x128xf32, #tpu.memory_space<vmem>>, %arg6: memref<128x128xbf16, #tpu.memory_space<vmem>>, %arg7: memref<1x128xf32, #tpu.memory_space<vmem>>, %arg8: memref<256x128xf32, #tpu.memory_space<vmem>>, %arg9: memref<256x128xf32, #tpu.memory_space<vmem>>, %arg10: memref<256x128xf32, #tpu.memory_space<vmem>>) attributes {dimension_semantics = [#tpu.dimension_semantics<parallel>, #tpu.dimension_semantics<arbitrary>], iteration_bounds = array<i64: 4, 2>, scalar_prefetch = 0 : i64, scratch_operands = 1 : i64, tpu.core_type = #tpu.core_type<tc>, window_params = [{transform_indices = @transform_0, window_bounds = array<i64: 256, 512>}, {transform_indices = @transform_1, window_bounds = array<i64: 512, 128>}, {pipeline_mode = #tpu.pipeline_mode<synchronous>, transform_indices = @transform_2, window_bounds = array<i64: 1, 128, 128>}, {pipeline_mode = #tpu.pipeline_mode<synchronous>, transform_indices = @transform_3, window_bounds = array<i64: 6, 128>}, {pipeline_mode = #tpu.pipeline_mode<synchronous>, transform_indices = @transform_4, window_bounds = array<i64: 128, 128>}, {pipeline_mode = #tpu.pipeline_mode<synchronous>, transform_indices = @transform_5, window_bounds = array<i64: 1, 128>}, {transform_indices = @transform_6, window_bounds = array<i64: 256, 128>}, {transform_indices = @transform_7, window_bounds = array<i64: 256, 128>}]} {
    %c0_i32 = arith.constant 0 : i32
    %0 = arith.cmpi eq, %arg1, %c0_i32 : i32
    %1 = arith.extui %0 : i1 to i32
    %c0_i32_0 = arith.constant 0 : i32
    %2 = arith.cmpi ne, %1, %c0_i32_0 : i32
    scf.if %2 {
      %cst_9 = arith.constant 0.000000e+00 : f32
      %12 = vector.broadcast %cst_9 : f32 to vector<256x128xf32>
      %c0_10 = arith.constant 0 : index
      %c0_11 = arith.constant 0 : index
      %13 = vector.load %arg10[%c0_10, %c0_11] : memref<256x128xf32, #tpu.memory_space<vmem>>, vector<256x128xf32>
      tpu.vector_store %arg10[%c0_10, %c0_11], %12 {strides = array<i32>} : memref<256x128xf32, #tpu.memory_space<vmem>>, vector<256x128xf32>,
    } else {
    }
    %c0 = arith.constant 0 : index
    %c0_1 = arith.constant 0 : index
    %3 = vector.load %arg10[%c0, %c0_1] : memref<256x128xf32, #tpu.memory_space<vmem>>, vector<256x128xf32>
    %c0_2 = arith.constant 0 : index
    %c0_3 = arith.constant 0 : index
    %4 = vector.load %arg2[%c0_2, %c0_3] : memref<256x512xbf16, #tpu.memory_space<vmem>>, vector<256x512xbf16>
    %c0_4 = arith.constant 0 : index
    %c0_5 = arith.constant 0 : index
    %5 = vector.load %arg3[%c0_4, %c0_5] : memref<512x128xbf16, #tpu.memory_space<vmem>>, vector<512x128xbf16>
    %cst = arith.constant dense<0.000000e+00> : vector<256x128xf32>
    %6 = tpu.matmul %4, %5, %cst {dimension_numbers = #tpu.dot_dimension_numbers<[1], [0], [0], [1], [0, 0, 1, 1], [], []>} : vector<256x512xbf16>, vector<512x128xbf16>, vector<256x128xf32> -> vector<256x128xf32>
    %7 = arith.addf %3, %6 : vector<256x128xf32>
    %c0_6 = arith.constant 0 : index
    %c0_7 = arith.constant 0 : index
    %8 = vector.load %arg10[%c0_6, %c0_7] : memref<256x128xf32, #tpu.memory_space<vmem>>, vector<256x128xf32>
    tpu.vector_store %arg10[%c0_6, %c0_7], %7 {strides = array<i32>} : memref<256x128xf32, #tpu.memory_space<vmem>>, vector<256x128xf32>,
    %c1_i32 = arith.constant 1 : i32
    %9 = arith.cmpi eq, %arg1, %c1_i32 : i32
    %10 = arith.extui %9 : i1 to i32
    %c0_i32_8 = arith.constant 0 : i32
    %11 = arith.cmpi ne, %10, %c0_i32_8 : i32
    scf.if %11 {
      %c0_9 = arith.constant 0 : index
      %c0_10 = arith.constant 0 : index
      %12 = vector.load %arg10[%c0_9, %c0_10] : memref<256x128xf32, #tpu.memory_space<vmem>>, vector<256x128xf32>
      %c0_11 = arith.constant 0 : index
      %c0_12 = arith.constant 0 : index
      %13 = vector.load %arg5[%c0_11, %c0_12] : memref<6x128xf32, #tpu.memory_space<vmem>>, vector<1x128xf32>
      %14 = vector.broadcast %13 : vector<1x128xf32> to vector<256x128xf32>
      %15 = arith.addf %12, %14 : vector<256x128xf32>
      %cst_13 = arith.constant 0.000000e+00 : f32
      %16 = vector.broadcast %cst_13 : f32 to vector<256x128xf32>
      %17 = arith.maximumf %15, %16 : vector<256x128xf32>
      %c1 = arith.constant 1 : index
      %c0_14 = arith.constant 0 : index
      %18 = vector.load %arg5[%c1, %c0_14] : memref<6x128xf32, #tpu.memory_space<vmem>>, vector<1x128xf32>
      %19 = vector.broadcast %18 : vector<1x128xf32> to vector<256x128xf32>
      %20 = arith.mulf %17, %19 : vector<256x128xf32>
      %c2 = arith.constant 2 : index
      %c0_15 = arith.constant 0 : index
      %21 = vector.load %arg5[%c2, %c0_15] : memref<6x128xf32, #tpu.memory_space<vmem>>, vector<1x128xf32>
      %22 = vector.broadcast %21 : vector<1x128xf32> to vector<256x128xf32>
      %23 = arith.addf %20, %22 : vector<256x128xf32>
      %24 = arith.truncf %23 : vector<256x128xf32> to vector<256x128xbf16>
      %c0_16 = arith.constant 0 : index
      %c0_17 = arith.constant 0 : index
      %c0_18 = arith.constant 0 : index
      %25 = vector.load %arg4[%c0_16, %c0_17, %c0_18] : memref<1x128x128xbf16, #tpu.memory_space<vmem>>, vector<1x128x128xbf16>
      %26 = vector.shape_cast %25 : vector<1x128x128xbf16> to vector<128x128xbf16>
      %cst_19 = arith.constant dense<0.000000e+00> : vector<256x128xf32>
      %27 = tpu.matmul %24, %26, %cst_19 {dimension_numbers = #tpu.dot_dimension_numbers<[1], [0], [0], [1], [0, 0, 1, 1], [], []>} : vector<256x128xbf16>, vector<128x128xbf16>, vector<256x128xf32> -> vector<256x128xf32>
      %c3 = arith.constant 3 : index
      %c0_20 = arith.constant 0 : index
      %28 = vector.load %arg5[%c3, %c0_20] : memref<6x128xf32, #tpu.memory_space<vmem>>, vector<1x128xf32>
      %29 = vector.broadcast %28 : vector<1x128xf32> to vector<256x128xf32>
      %30 = arith.addf %27, %29 : vector<256x128xf32>
      %cst_21 = arith.constant 0.000000e+00 : f32
      %31 = vector.broadcast %cst_21 : f32 to vector<256x128xf32>
      %32 = arith.maximumf %30, %31 : vector<256x128xf32>
      %c4 = arith.constant 4 : index
      %c0_22 = arith.constant 0 : index
      %33 = vector.load %arg5[%c4, %c0_22] : memref<6x128xf32, #tpu.memory_space<vmem>>, vector<1x128xf32>
      %34 = vector.broadcast %33 : vector<1x128xf32> to vector<256x128xf32>
      %35 = arith.mulf %32, %34 : vector<256x128xf32>
      %c5 = arith.constant 5 : index
      %c0_23 = arith.constant 0 : index
      %36 = vector.load %arg5[%c5, %c0_23] : memref<6x128xf32, #tpu.memory_space<vmem>>, vector<1x128xf32>
      %37 = vector.broadcast %36 : vector<1x128xf32> to vector<256x128xf32>
      %38 = arith.addf %35, %37 : vector<256x128xf32>
      %c0_24 = arith.constant 0 : index
      %c0_25 = arith.constant 0 : index
      %39 = vector.load %arg8[%c0_24, %c0_25] : memref<256x128xf32, #tpu.memory_space<vmem>>, vector<256x128xf32>
      tpu.vector_store %arg8[%c0_24, %c0_25], %38 {strides = array<i32>} : memref<256x128xf32, #tpu.memory_space<vmem>>, vector<256x128xf32>,
      %40 = arith.truncf %38 : vector<256x128xf32> to vector<256x128xbf16>
      %c0_26 = arith.constant 0 : index
      %c0_27 = arith.constant 0 : index
      %41 = vector.load %arg6[%c0_26, %c0_27] : memref<128x128xbf16, #tpu.memory_space<vmem>>, vector<128x128xbf16>
      %cst_28 = arith.constant dense<0.000000e+00> : vector<256x128xf32>
      %42 = tpu.matmul %40, %41, %cst_28 {dimension_numbers = #tpu.dot_dimension_numbers<[1], [0], [0], [1], [0, 0, 1, 1], [], []>} : vector<256x128xbf16>, vector<128x128xbf16>, vector<256x128xf32> -> vector<256x128xf32>
      %c0_29 = arith.constant 0 : index
      %c0_30 = arith.constant 0 : index
      %43 = vector.load %arg7[%c0_29, %c0_30] : memref<1x128xf32, #tpu.memory_space<vmem>>, vector<1x128xf32>
      %44 = vector.broadcast %43 : vector<1x128xf32> to vector<256x128xf32>
      %45 = arith.addf %42, %44 : vector<256x128xf32>
      %c0_31 = arith.constant 0 : index
      %c0_32 = arith.constant 0 : index
      %46 = vector.load %arg9[%c0_31, %c0_32] : memref<256x128xf32, #tpu.memory_space<vmem>>, vector<256x128xf32>
      tpu.vector_store %arg9[%c0_31, %c0_32], %45 {strides = array<i32>} : memref<256x128xf32, #tpu.memory_space<vmem>>, vector<256x128xf32>,
    } else {
    }
    return
  }
  func.func @transform_0(%arg0: i32, %arg1: i32) -> (i32, i32) {
    %c0_i32 = arith.constant 0 : i32
    return %arg0, %arg1 : i32, i32
  }
  func.func @transform_1(%arg0: i32, %arg1: i32) -> (i32, i32) {
    %c0_i32 = arith.constant 0 : i32
    %c0_i32_0 = arith.constant 0 : i32
    return %arg1, %c0_i32 : i32, i32
  }
  func.func @transform_2(%arg0: i32, %arg1: i32) -> (i32, i32, i32) {
    %c0_i32 = arith.constant 0 : i32
    %c0_i32_0 = arith.constant 0 : i32
    %c0_i32_1 = arith.constant 0 : i32
    %c0_i32_2 = arith.constant 0 : i32
    return %c0_i32, %c0_i32_0, %c0_i32_1 : i32, i32, i32
  }
  func.func @transform_3(%arg0: i32, %arg1: i32) -> (i32, i32) {
    %c0_i32 = arith.constant 0 : i32
    %c0_i32_0 = arith.constant 0 : i32
    %c0_i32_1 = arith.constant 0 : i32
    return %c0_i32, %c0_i32_0 : i32, i32
  }
  func.func @transform_4(%arg0: i32, %arg1: i32) -> (i32, i32) {
    %c0_i32 = arith.constant 0 : i32
    %c0_i32_0 = arith.constant 0 : i32
    %c0_i32_1 = arith.constant 0 : i32
    return %c0_i32, %c0_i32_0 : i32, i32
  }
  func.func @transform_5(%arg0: i32, %arg1: i32) -> (i32, i32) {
    %c0_i32 = arith.constant 0 : i32
    %c0_i32_0 = arith.constant 0 : i32
    %c0_i32_1 = arith.constant 0 : i32
    return %c0_i32, %c0_i32_0 : i32, i32
  }
  func.func @transform_6(%arg0: i32, %arg1: i32) -> (i32, i32) {
    %c0_i32 = arith.constant 0 : i32
    %c0_i32_0 = arith.constant 0 : i32
    return %arg0, %c0_i32 : i32, i32
  }
  func.func @transform_7(%arg0: i32, %arg1: i32) -> (i32, i32) {
    %c0_i32 = arith.constant 0 : i32
    %c0_i32_0 = arith.constant 0 : i32
    return %arg0, %c0_i32 : i32, i32
  }
}

</mosaic_0001>

<bundles_post_ra>
// kernel: tpu_custom_call.1
= control target key start
LH: loop header
LB: loop body
LE: loop exit
PB: predicated region body
PF: predicated region fallthrough
CT: control target
= control target key end

     0   :  { %s4647_s0 = inlined_call_operand.hbm [shape: bf16[1024,1024], index: 0, kind: input, shape index: {}]   ;;  %s4648_s1 = inlined_call_operand.hbm [shape: bf16[1024,128], index: 1, kind: input, shape index: {}]   ;;  %s4649_s2 = inlined_call_operand.hbm [shape: bf16[1,128,128], index: 2, kind: input, shape index: {}]   ;;  %s4650_s3 = inlined_call_operand.hbm [shape: f32[6,128], index: 3, kind: input, shape index: {}]   ;;  %s4651_s4 = inlined_call_operand.hbm [shape: bf16[128,128], index: 4, kind: input, shape index: {}]   ;;  %s4652_s5 = inlined_call_operand.hbm [shape: f32[1,128], index: 5, kind: input, shape index: {}]   ;;  %s4653_s6 = inlined_call_operand.hbm [shape: f32[1024,128], index: 6, kind: output, shape index: {0}]   ;;  %s4654_s7 = inlined_call_operand.hbm [shape: f32[1024,128], index: 7, kind: output, shape index: {1}]  }
   0x1   :  { %4679 = sst [smem:[#allocation36_spill]] %s4647_s0 }
   0x2   :  { %4680 = sst [smem:[#allocation37_spill]] %s4649_s2 }
   0x3   :  { %4681 = sst [smem:[#allocation38_spill]] %s4650_s3 }
   0x4   :  { %4682 = sst [smem:[#allocation39_spill]] %s4651_s4 }
   0x5   :  { %4683 = sst [smem:[#allocation40_spill]] %s4652_s5 }
   0x6   :  { %4684 = sst [smem:[#allocation41_spill]] %s4653_s6 }
   0x7   :  { %4685 = sst [smem:[#allocation42_spill]] %s4654_s7 }
   0x8   :  { %13 = vsyncpa [#allocation4], 0 }
   0x9   :  { %15 = vsyncpa [#allocation4 + $0x1], 0 }
   0xa   :  { %16 = vsyncpa [#allocation7], 0 }
   0xb   :  { %18 = vsyncpa [#allocation7 + $0x1], 0 }
   0xc   :  { %19 = vsyncpa [#allocation10], 0 }
   0xd   :  { %20 = vsyncpa [#allocation13], 0 }
   0xe   :  { %21 = vsyncpa [#allocation5], 0 }
   0xf   :  { %23 = vsyncpa [#allocation5 + $0x1], 0 }
  0x10   :  { %24 = vsyncpa [#allocation16], 0 }
  0x11   :  { %26 = vsyncpa [#allocation16 + $0x1], 0  ;;  %s3840_s24 = smov 0   ;;  %s3842_s25 = smov 0  }
  0x12   :  { %s3844_s26 = smov 0   ;;  %s3846_s27 = smov 0  }
  0x13   :  { %s3848_s28 = smov 0   ;;  %s3850_s29 = smov 0  }
  0x14   :  { %s3852_s30 = smov 0   ;;  %s3854_s8 = smov 0  }
  0x15   :  { %s3856_s9 = smov 0   ;;  %s3858_s10 = smov 0  }
  0x16   :  { %s3860_s11 = smov 0   ;;  %s3862_s12 = smov 0  }
  0x17   :  { %s3864_s13 = smov 0   ;;  %s3866_s14 = smov 0  }
  0x18 LB: > { %4686 = sst [smem:[#allocation24_spill]] %s3730_s24  ;;  %s3907_s15 = sadd.s32 4294967295, %s3782_s14   ;;  %s3782_s14 = sphi %s3866_s14, %s32_s14   ;;  %s3778_s13 = sphi %s3864_s13, %s4741_s13   ;;  %s3774_s12 = sphi %s3862_s12, %s4751_s12   ;;  %s3770_s11 = sphi %s3860_s11, %s4739_s11   ;;  %s3766_s10 = sphi %s3858_s10, %s4750_s10   ;;  %s3762_s9 = sphi %s3856_s9, %s4749_s9   ;;  %s3758_s8 = sphi %s3854_s8, %s4748_s8   ;;  %s3754_s30 = sphi %s3852_s30, %s4747_s30   ;;  %s3750_s29 = sphi %s3850_s29, %s4746_s29   ;;  %s3746_s28 = sphi %s3848_s28, %s4745_s28   ;;  %s3742_s27 = sphi %s3846_s27, %s4744_s27   ;;  %s3738_s26 = sphi %s3844_s26, %s4743_s26   ;;  %s3734_s25 = sphi %s3842_s25, %s4742_s25   ;;  %s3730_s24 = sphi %s3840_s24, %s4738_s24  }
  0x19   : > { %4687 = sst [smem:[#allocation25_spill]] %s3734_s25  ;;  %s2578_s16 = sadd.s32 4294967294, %s3782_s14  }
  0x1a   : > { %4688 = sst [smem:[#allocation26_spill]] %s3766_s10  ;;  %p66_p0 = scmp.ne.s32.totalorder %s3758_s8, %s3754_s30 }
  0x1b   : > { %4689 = sst [smem:[#allocation27_spill]] %s3770_s11  ;;  %p4665_p1 = scmp.eq.s32.totalorder %s3907_s15, 0 }
  0x1c   : > { %4690 = sst [smem:[#allocation28_spill]] %s3778_s13  ;;  %p92_p2 = scmp.ne.s32.totalorder %s3746_s28, %s3742_s27 }
  0x1d   : > { %4691 = sst [smem:[#allocation29_spill]] %s3907_s15  ;;  %p199_p3 = scmp.ne.s32.totalorder %s3738_s26, %s3734_s25 }
  0x1e   : > { %p3917_p4 = por %p4665_p1, %p66_p0  ;;  %p200_p5 = scmp.eq.s32.totalorder %s3907_s15, 7 }
  0x1f   : > { %p3924_p6 = por %p92_p2, %p4665_p1  ;;  %p205_p7 = scmp.ne.s32.totalorder %s3734_s25, %s3730_s24 }
  0x20   : > { %s4692_s17 = scalar_select %p3917_p4, 1, 0 }
  0x21   : > { %s4694_s18 = scalar_select %p3924_p6, 1, 0 }
  0x22   : > { %4693 = sst [smem:[#allocation30_spill]] %s4692_s17  ;;  %p3930_p8 = por %p200_p5, %p199_p3 }
  0x23   : > { %4695 = sst [smem:[#allocation31_spill]] %s4694_s18  ;;  %p206_p9 = scmp.eq.s32.totalorder %s2578_s16, 7 }
  0x24   : > { %s4696_s19 = scalar_select %p3930_p8, 1, 0 }
  0x25   : > { %p2579_p10 = scmp.ge.s32.totalorder %s3782_s14, 1  ;;  %p239_p11 = scmp.lt.s32.totalorder %s3782_s14, 9 }
  0x26   : > { %4697 = sst [smem:[#allocation32_spill]] %s4696_s19  ;;  %p3936_p12 = por %p206_p9, %p205_p7 }
  0x27   : > { %p3940_p13 = pnand %p2579_p10, %p239_p11  ;;  %s3784_s22 = smov [#allocation8]  }
  0x28   : > { %s4698_s20 = scalar_select %p3936_p12, 1, 0 }
  0x29   : > { %s251_s23 = sshll.u32 %s3784_s22, 4  ;;  %p3127_p0 = pneg %p3940_p13  ;;  %s252_s23 = int_to_ptr.vmem [resolvable:$true] %s251_s23 }
  0x2a   : > { %4699 = sst [smem:[#allocation33_spill]] %s4698_s20  ;;  %s3785_s30 = smov [#allocation9]  }
  0x2b   : > { %p3948_p2 = pnand %p3127_p0, %p4665_p1  ;;  %s265_s16 = sshll.u32 %s3785_s30, 4  ;;  %s266_s16 = int_to_ptr.vmem [resolvable:$true] %s265_s16 }
  0x2c   : > { %s3443_s20 = scalar_lea.vmem %s252_s23, 1024  ;;  %p3451_p10 = scmp.lt.s32.totalorder %s252_s23, %s252_s23 }
  0x2d   : > { %p3434_p3 = pneg %p3948_p2  ;;  %p3444_p5 = scmp.ne.s32.totalorder %s252_s23, %s3443_s20 }
  0x2e   : > { %p3452_p11 = scmp.lt.s32.totalorder %s3443_s20, %s3443_s20 }
  0x2f   : > { %p3446_p7 = pnand %p3444_p5, %p3434_p3 }
  0x30   : > { %p3453_p12 = por %p3452_p11, %p3451_p10 }
  0x31   : > { %p3447_p9 = pneg %p3446_p7 }
  0x33   : > { %p3454_p0 = pnand %p3453_p12, %p3447_p9 }
  0x35   : > { %3457 = shalt.err (!%p3454_p0)
}
  0x36   : > { %s4661_s22 = smov 64   ;;  %s4663_s24 = smov 4  }
  0x37   : > { %s4702_s2 = sld [smem:[#allocation37_spill]]  ;;  %s3469_s6 = scalar_lea.vmem %s266_s16, 128 }
  0x38   : > { %p3470_p5 = scmp.ne.s32.totalorder %s266_s16, %s3469_s6  ;;  %p3477_p12 = scmp.lt.s32.totalorder %s266_s16, %s266_s16 }
  0x39   : > { %p3478_p9 = scmp.lt.s32.totalorder %s3469_s6, %s3469_s6 }
  0x3a   : > { %p3472_p7 = pnand %p3470_p5, %p3434_p3 }
  0x3b   : > { %p3479_p11 = por %p3478_p9, %p3477_p12 }
  0x3c   : > { %p3473_p10 = pneg %p3472_p7 }
  0x3d   : > { %3130 = dma.hbm_to_vmem [thread:$0]  (!%p3948_p2), %s4702_s2, 1024, %s252_s23, [#allocation7], %s4661_s22, %s4661_s22, %s4663_s24  }
  0x3e   : > { %p3480_p0 = pnand %p3479_p11, %p3473_p10 }
  0x40   : > { %3483 = shalt.err (!%p3480_p0)
}
  0x41   : > { %s4703_s3 = sld [smem:[#allocation38_spill]]  ;;  %s3788_s7 = smov [#allocation11]  }
  0x42   : > { %s275_s23 = sshll.u32 %s3788_s7, 4  ;;  %s3789_s30 = smov [#allocation12]   ;;  %s276_s23 = int_to_ptr.vmem [resolvable:$true] %s275_s23 }
  0x43   : > { %s289_s22 = sshll.u32 %s3789_s30, 4  ;;  %s3495_s24 = scalar_lea.vmem %s276_s23, 1024  ;;  %s290_s22 = int_to_ptr.vmem [resolvable:$true] %s289_s22 }
  0x44   : > { %p3496_p5 = scmp.ne.s32.totalorder %s276_s23, %s3495_s24  ;;  %p3503_p10 = scmp.lt.s32.totalorder %s276_s23, %s276_s23 }
  0x45   : > { %p3504_p9 = scmp.lt.s32.totalorder %s3495_s24, %s3495_s24 }
  0x46   : > { %p3498_p7 = pnand %p3496_p5, %p3434_p3 }
  0x47   : > { %3133 = dma.hbm_to_vmem [thread:$0]  (!%p3948_p2), %s4703_s3, 128, %s266_s16, [#allocation10]  }
  0x48   : > { %p3499_p12 = pneg %p3498_p7  ;;  %p3505_p11 = por %p3504_p9, %p3503_p10 }
  0x4a   : > { %p3506_p0 = pnand %p3505_p11, %p3499_p12 }
  0x4c   : > { %3509 = shalt.err (!%p3506_p0)
}
  0x4d   : > { %s4704_s6 = smov 4   ;;  %s4705_s19 = smov 64  }
  0x4e   : > { %s4706_s4 = sld [smem:[#allocation39_spill]]  ;;  %s3521_s7 = scalar_lea.vmem %s290_s22, 16 }
  0x4f   : > { %p3522_p1 = scmp.ne.s32.totalorder %s290_s22, %s3521_s7  ;;  %s3528_s24 = scalar_lea.vmem %s290_s22, 32 }
  0x50   : > { %p3529_p12 = scmp.lt.s32.totalorder %s290_s22, %s290_s22  ;;  %p3530_p10 = scmp.lt.s32.totalorder %s3528_s24, %s3521_s7 }
  0x51   : > { %p3524_p5 = pnand %p3522_p1, %p3434_p3 }
  0x52   : > { %p3531_p9 = por %p3530_p10, %p3529_p12 }
  0x53   : > { %p3525_p7 = pneg %p3524_p5 }
  0x54   : > { %3136 = dma.hbm_to_vmem [thread:$0]  (!%p3948_p2), %s4706_s4, 1024, %s276_s23, [#allocation10], %s4705_s19, %s4705_s19, %s4704_s6  }
  0x55   : > { %p3532_p11 = pnand %p3531_p9, %p3525_p7 }
  0x57   : > { %3535 = shalt.err (!%p3532_p11)
}
  0x58   : > { %s4707_s5 = sld [smem:[#allocation40_spill]]  ;;  %s41_s23 = sadd.s32 1, %s3774_s12 }
  0x59   : > { %p42_p1 = scmp.ge.s32.totalorder %s41_s23, 2  ;;  %s44_s27 = sadd.s32 1, %s3778_s13 }
  0x5a   : > { %s53_s16 = sadd.s32 1, %s3762_s9  ;;  %p60_p3 = scmp.ne.s32.totalorder %s3762_s9, %s3758_s8 }
  0x5b   : > { %s4753_s23 = smov (%p42_p1, %s41_s23), 0  ;;  %s4755_s27 = smov (!%p42_p1, %s44_s27), %s3778_s13 }
  0x5c   : > { %4708 = sst [smem:[#allocation34_spill]] %s4753_s23  ;;  %s4002_s2 = ssub.s32 %s3774_s12, %s4753_s23 }
  0x5d   : > { %p4677_p0 = scmp.eq.s32.totalorder %s3782_s14, 0  ;;  %p77_p5 = scmp.eq.s32.totalorder %s4002_s2, 0 }
  0x5e   : > { %3139 = dma.hbm_to_vmem [thread:$0]  (!%p3948_p2), %s4707_s5, 16, %s290_s22, [#allocation13]  }
  0x5f   : > { %p46_p2 = scmp.ge.s32.totalorder %s4755_s27, 4  ;;  %p4008_p7 = por %p4677_p0, %p60_p3 }
  0x60   : > { %s189_s20 = sadd.s32 1, %s3738_s26  ;;  %p4676_p12 = scmp.lt.s32.totalorder %s3782_s14, 8 }
  0x61   : > { %s4757_s27 = smov (%p46_p2, %s4755_s27), 0  ;;  %s300_s7 = sand.u32 1, %s3762_s9  }
  0x62   : > { %4710 = sst [smem:[#allocation35_spill]] %s4757_s27  ;;  %s48_s24 = ssub.s32 %s3778_s13, %s4757_s27 }
  0x63   : > { %s50_s30 = sor.u32 %s4002_s2, %s48_s24  ;;  %p187_p10 = scmp.eq.s32.totalorder %s48_s24, 0 }
  0x64   : > { %p51_p9 = scmp.eq.s32.totalorder %s50_s30, 0  ;;  %s2585_s3 = sshll.u32 %s300_s7, 9 }
  0x65   : > { %s4021_s4 = scalar_select %p187_p10, %s3738_s26, %s189_s20  }
  0x66   : > { %s4024_s5 = scalar_select %p51_p9, %s3762_s9, %s53_s16  }
  0x67   : > { %s2587_s23 = sshll.u32 %s3774_s12, 2  ;;  %s2731_s11 = sshll.u32 %s3778_s13, 8 }
  0x68   : > { %s304_s10 = scalar_lea.vmem [#allocation3], %s2585_s3  ;;  %s311_s18 = sadd.s32 %s2731_s11, %s2587_s23 }
  0x69   : > { %s314_s25 = sshll.u32 %s304_s10, 4  ;;  %s2589_s15 = sshll.u32 %s311_s18, 6  ;;  %s315_s25 = int_to_ptr.vmem [resolvable:$true] %s314_s25 }
  0x6a   : > { %p4032_p11 = pnand %p4676_p12, %p4008_p7  ;;  %s4712_s0 = sld [smem:[#allocation36_spill]] }
  0x6b   : > { %s301_s16 = scalar_lea.sflag [#allocation4], %s300_s7  ;;  %s3549_s27 = scalar_lea.vmem %s315_s25, 8192 }
  0x6c   : > { %p3538_p1 = pneg %p4032_p11  ;;  %p3550_p3 = scmp.ne.s32.totalorder %s315_s25, %s3549_s27 }
  0x6d   : > { %s3790_s3 = smov [#allocation3]  }
  0x6e   : > { %p3552_p2 = pnand %p3550_p3, %p3538_p1  ;;  %s3554_s10 = sshll.u32 %s3790_s3, 4  ;;  %s3555_s10 = int_to_ptr.vmem [resolvable:$false] %s3554_s10 }
  0x6f   : > { %s3556_s11 = scalar_lea.vmem %s3555_s10, 16384  ;;  %p3557_p7 = scmp.lt.s32.totalorder %s315_s25, %s3555_s10 }
  0x70   : > { %s313_s20 = scalar_lea.hbm %s4712_s0, %s2589_s15  ;;  %p3553_p10 = pneg %p3552_p2 }
  0x71   : > { %p3558_p9 = scmp.lt.s32.totalorder %s3556_s11, %s3549_s27 }
  0x73   : > { %p3559_p12 = por %p3558_p9, %p3557_p7 }
  0x75   : > { %p3560_p0 = pnand %p3559_p12, %p3553_p10 }
  0x77   : > { %3563 = shalt.err (!%p3560_p0)
}
  0x78   : > { %s3791_s18 = smov 512   ;;  %s3792_s15 = smov 256  }
  0x79   : > { %s3793_s23 = smov 16   ;;  %s324_s27 = sand.u32 1, %s3782_s14  }
  0x7a   : > { %3143 = dma.hbm_to_vmem [thread:$0]  (!%p4032_p11), %s313_s20, 8192, %s315_s25, %s301_s16, %s3791_s18, %s3792_s15, %s3793_s23  }
  0x7b   : > { %s79_s22 = sadd.s32 1, %s3750_s29  ;;  %p86_p12 = scmp.ne.s32.totalorder %s3750_s29, %s3746_s28 }
  0x7c   : > { %s4050_s7 = scalar_select %p77_p5, %s3750_s29, %s79_s22  }
  0x7d   : > { %p4713_p0 = scmp.eq.s32.totalorder %s3782_s14, 0  ;;  %s326_s24 = sand.u32 1, %s3750_s29  }
  0x7e   : > { %s2732_s30 = sshll.u32 %s3774_s12, 12  ;;  %s2590_s3 = sshll.u32 %s326_s24, 8 }
  0x7f   : > { %p88_p1 = por %p86_p12, %p4713_p0  ;;  %s334_s0 = scalar_lea.hbm %s4648_s1, %s2732_s30 }
  0x80   : > { %p4714_p3 = scmp.lt.s32.totalorder %s3782_s14, 8  ;;  %s328_s25 = scalar_lea.vmem [#allocation6], %s2590_s3 }
  0x81   : > { %s335_s17 = sshll.u32 %s328_s25, 4  ;;  %s325_s2 = scalar_lea.sflag [#allocation7], %s324_s27  ;;  %s336_s17 = int_to_ptr.vmem [resolvable:$true] %s335_s17 }
  0x82   : > { %p4061_p2 = pnand %p4714_p3, %p88_p1  ;;  %s3577_s20 = scalar_lea.vmem %s336_s17, 4096 }
  0x83   : > { %p3578_p11 = scmp.ne.s32.totalorder %s336_s17, %s3577_s20  ;;  %s3794_s16 = smov [#allocation6]  }
  0x84   : > { %p3566_p5 = pneg %p4061_p2  ;;  %s3582_s18 = sshll.u32 %s3794_s16, 4  ;;  %s3583_s18 = int_to_ptr.vmem [resolvable:$false] %s3582_s18 }
  0x85   : > { %s3584_s15 = scalar_lea.vmem %s3583_s18, 8192  ;;  %p3585_p9 = scmp.lt.s32.totalorder %s336_s17, %s3583_s18 }
  0x86   : > { %p3580_p10 = pnand %p3578_p11, %p3566_p5  ;;  %p3586_p12 = scmp.lt.s32.totalorder %s3584_s15, %s3577_s20 }
  0x88   : > { %p3581_p7 = pneg %p3580_p10  ;;  %p3587_p0 = por %p3586_p12, %p3585_p9 }
  0x8a   : > { %p3588_p1 = pnand %p3587_p0, %p3581_p7 }
  0x8c   : > { %3591 = shalt.err (!%p3588_p1)
}
  0x8d   : > { %3146 = dma.hbm_to_vmem [thread:$0]  (!%p4061_p2), %s334_s0, 4096, %s336_s17, %s325_s2, %s4705_s19, %s4705_s19, %s4704_s6  }
  0x8e   : > { %347 = sbr.rel (%p3940_p13) target bundleno = 1109 (0x455), region = 44  ;;  %s349_s27 = sand.u32 (!%p3940_p13), 1, %s3758_s8  }
  0x8f   : > { %s2594_s22 = sshll.u32 (!%p3940_p13), %s349_s27, 9  ;;  %s350_s24 = scalar_lea.sflag (!%p3940_p13), [#allocation4], %s349_s27 }
  0x90   : > { %s4075_s30 = scalar_lea.vmem (!%p3940_p13), [#allocation3], %s2594_s22 }
  0x93   : > { %3701 = dma.done.wait (%p3917_p4), %s350_s24, 8192  }
  0x94   : > { %3703 = vsyncadd (%p3917_p4), %s350_s24, 4294959104  ;;  %s4717_s13 = sld [smem:[#allocation29_spill]]  ;;  %s360_s0 = sand.u32 1, %s3746_s28  }
  0x95   : > { %s2595_s6 = sshll.u32 %s360_s0, 8 }
  0x96   : > { %s4083_s19 = scalar_lea.vmem [#allocation6], %s2595_s6 }
  0x9a   : > { %s358_s10 = sand.u32 1, %s4717_s13  }
  0x9b   : > { %s359_s21 = scalar_lea.sflag [#allocation7], %s358_s10 }
  0x9c   : > { %3705 = dma.done.wait (%p3924_p6), %s359_s21, 4096  }
  0x9d   : > { %3707 = vsyncadd (%p3924_p6), %s359_s21, 4294963200  ;;  %p4719_p13 = scmp.eq.s32.totalorder %s4717_s13, 0 }
  0x9f   : > { %3709 = dma.done.wait (%p4719_p13), [#allocation7], 1024   ;;  %p4720_p3 = pmov %p4719_p13 }
  0xa1   : > { %3711 = vsyncadd (%p4720_p3), [#allocation7], 4294966272  ;;  %p4721_p4 = pmov %p4720_p3 }
  0xa2   : > { %p4722_p2 = pmov %p4720_p3 }
  0xa3   : > { %3713 = dma.done.wait (%p4721_p4), [#allocation10], 1152  }
  0xa4   : > { %3715 = vsyncadd (%p4722_p2), [#allocation10], 4294966144  ;;  %p4723_p5 = pmov %p4722_p2 }
  0xa5   : > { %p4724_p11 = pmov %p4722_p2 }
  0xa6   : > { %3717 = dma.done.wait (%p4723_p5), [#allocation13], 16  }
  0xa7   : > { %3719 = vsyncadd (%p4724_p11), [#allocation13], 4294967280  ;;  %s4725_s11 = sld [smem:[#allocation25_spill]] }
  0xa8   : > { %s4726_s16 = sld [smem:[#allocation26_spill]] }
  0xad   : > { %s4102_s25 = sand.u32 1, %s4725_s11  }
  0xae   : > { %s2600_s17 = sshll.u32 %s4102_s25, 8  ;;  %p2602_p6 = scmp.ne.s32.totalorder %s4726_s16, 0 }
  0xaf   : > { %s4105_s2 = scalar_lea.vmem [#allocation14], %s2600_s17  ;;  %s4107_s20 = scalar_lea.vmem [#allocation15], %s2600_s17 }
  0xb0   : > { %428 = sbr.rel (%p2602_p6) target bundleno = 198 (0xc6), region = 72 }
  0xb5   : > { %v3795_v0 = vmov 0.0  }
  0xb6   : > { %429 = vst [vmem:[#allocation2 + $0xb0] sm:$0xff] %v3795_v0  ;;  %430 = vst [vmem:[#allocation2] sm:$0xff] %v3795_v0 }
  0xb7   : > { %431 = vst [vmem:[#allocation2 + $0xd8] sm:$0xff] %v3795_v0  ;;  %432 = vst [vmem:[#allocation2 + $0x18] sm:$0xff] %v3795_v0 }
  0xb8   : > { %433 = vst [vmem:[#allocation2 + $0x50] sm:$0xff] %v3795_v0  ;;  %434 = vst [vmem:[#allocation2 + $0x68] sm:$0xff] %v3795_v0 }
  0xb9   : > { %435 = vst [vmem:[#allocation2 + $0x30] sm:$0xff] %v3795_v0  ;;  %436 = vst [vmem:[#allocation2 + $0x48] sm:$0xff] %v3795_v0 }
  0xba   : > { %437 = vst [vmem:[#allocation2 + $0x80] sm:$0xff] %v3795_v0  ;;  %438 = vst [vmem:[#allocation2 + $0x88] sm:$0xff] %v3795_v0 }
  0xbb   : > { %439 = vst [vmem:[#allocation2 + $0xe8] sm:$0xff] %v3795_v0  ;;  %440 = vst [vmem:[#allocation2 + $0xb8] sm:$0xff] %v3795_v0 }
  0xbc   : > { %441 = vst [vmem:[#allocation2 + $0x60] sm:$0xff] %v3795_v0  ;;  %442 = vst [vmem:[#allocation2 + $0xf0] sm:$0xff] %v3795_v0 }
  0xbd   : > { %443 = vst [vmem:[#allocation2 + $0x8] sm:$0xff] %v3795_v0  ;;  %444 = vst [vmem:[#allocation2 + $0x78] sm:$0xff] %v3795_v0 }
  0xbe   : > { %445 = vst [vmem:[#allocation2 + $0x38] sm:$0xff] %v3795_v0  ;;  %446 = vst [vmem:[#allocation2 + $0x58] sm:$0xff] %v3795_v0 }
  0xbf   : > { %447 = vst [vmem:[#allocation2 + $0x40] sm:$0xff] %v3795_v0  ;;  %448 = vst [vmem:[#allocation2 + $0xc8] sm:$0xff] %v3795_v0 }
  0xc0   : > { %449 = vst [vmem:[#allocation2 + $0xe0] sm:$0xff] %v3795_v0  ;;  %450 = vst [vmem:[#allocation2 + $0x90] sm:$0xff] %v3795_v0 }
  0xc1   : > { %451 = vst [vmem:[#allocation2 + $0x70] sm:$0xff] %v3795_v0  ;;  %452 = vst [vmem:[#allocation2 + $0xc0] sm:$0xff] %v3795_v0 }
  0xc2   : > { %453 = vst [vmem:[#allocation2 + $0xa8] sm:$0xff] %v3795_v0  ;;  %454 = vst [vmem:[#allocation2 + $0xd0] sm:$0xff] %v3795_v0 }
  0xc3   : > { %455 = vst [vmem:[#allocation2 + $0x10] sm:$0xff] %v3795_v0  ;;  %456 = vst [vmem:[#allocation2 + $0x28] sm:$0xff] %v3795_v0 }
  0xc4   : > { %457 = vst [vmem:[#allocation2 + $0xa0] sm:$0xff] %v3795_v0  ;;  %458 = vst [vmem:[#allocation2 + $0xf8] sm:$0xff] %v3795_v0 }
  0xc5   : > { %459 = vst [vmem:[#allocation2 + $0x20] sm:$0xff] %v3795_v0  ;;  %460 = vst [vmem:[#allocation2 + $0x98] sm:$0xff] %v3795_v0 }
  0xc6 PF: > { %v3288_v1 = vld [vmem:[%s4083_s19 + $0x78] sm:$0xff]   ;;  %v3292_v5 = vld [vmem:[%s4083_s19 + $0x70] sm:$0xff]   ;;  %v3296_v9 = vld [vmem:[%s4083_s19 + $0x68] sm:$0xff]   ;;  %s4727_s18 = sld [smem:[#allocation26_spill]] }
  0xc7   : > { %v3289_v2 = vld [vmem:[%s4083_s19 + $0xf8] sm:$0xff]   ;;  %2735 = vmatprep.subr.bf16.mxu0 %v3288_v1  ;;  %v3293_v6 = vld [vmem:[%s4083_s19 + $0xf0] sm:$0xff]   ;;  %v3297_v10 = vld [vmem:[%s4083_s19 + $0xe8] sm:$0xff]  }
  0xc8   : > { %v3290_v3 = vld [vmem:[%s4083_s19 + $0x38] sm:$0xff]   ;;  %2847 = vmatprep.subr.bf16.mxu1 %v3289_v2  ;;  %v3294_v7 = vld [vmem:[%s4083_s19 + $0x30] sm:$0xff]   ;;  %v3298_v11 = vld [vmem:[%s4083_s19 + $0x28] sm:$0xff]  }
  0xc9   : > { %v3291_v4 = vld [vmem:[%s4083_s19 + $0xb8] sm:$0xff]   ;;  %2736 = vmatpush3.bf16.msra.mxu0 %v3290_v3  ;;  %v3295_v8 = vld [vmem:[%s4083_s19 + $0xb0] sm:$0xff]   ;;  %v3299_v12 = vld [vmem:[%s4083_s19 + $0xa8] sm:$0xff]  }
  0xca   : > { %2848 = vmatpush3.bf16.msra.mxu1 %v3291_v4  ;;  %2737 = vmatprep.subr.bf16.mxu0 %v3292_v5  ;;  %v3300_v13 = vld [vmem:[%s4083_s19 + $0x60] sm:$0xff]   ;;  %v3304_v17 = vld [vmem:[%s4083_s19 + $0x58] sm:$0xff]   ;;  %v3308_v21 = vld [vmem:[%s4083_s19 + $0x50] sm:$0xff]  }
  0xcb   : > { %2849 = vmatprep.subr.bf16.mxu1 %v3293_v6  ;;  %v3301_v14 = vld [vmem:[%s4083_s19 + $0xe0] sm:$0xff]   ;;  %v3305_v18 = vld [vmem:[%s4083_s19 + $0xd8] sm:$0xff]   ;;  %v3309_v22 = vld [vmem:[%s4083_s19 + $0xd0] sm:$0xff]  }
  0xcc   : > { %v3302_v15 = vld [vmem:[%s4083_s19 + $0x20] sm:$0xff]   ;;  %v3306_v19 = vld [vmem:[%s4083_s19 + $0x18] sm:$0xff]   ;;  %v3310_v23 = vld [vmem:[%s4083_s19 + $0x10] sm:$0xff]   ;;  %p2699_p10 = scmp.ne.s32.totalorder %s4727_s18, 1 }
  0xcd   : > { %2738 = vmatpush3.bf16.msra.mxu0 %v3294_v7  ;;  %v3303_v16 = vld [vmem:[%s4083_s19 + $0xa0] sm:$0xff]   ;;  %v3307_v20 = vld [vmem:[%s4083_s19 + $0x98] sm:$0xff]   ;;  %v3311_v24 = vld [vmem:[%s4083_s19 + $0x90] sm:$0xff]  }
  0xce   : > { %2850 = vmatpush3.bf16.msra.mxu1 %v3295_v8  ;;  %2739 = vmatprep.subr.bf16.mxu0 %v3296_v9  ;;  %v3312_v25 = vld [vmem:[%s4083_s19 + $0x48] sm:$0xff]   ;;  %v3316_v29 = vld [vmem:[%s4083_s19 + $0x40] sm:$0xff]  }
  0xcf   : > { %2851 = vmatprep.subr.bf16.mxu1 %v3297_v10  ;;  %v3313_v26 = vld [vmem:[%s4083_s19 + $0xc8] sm:$0xff]   ;;  %v3317_v30 = vld [vmem:[%s4083_s19 + $0xc0] sm:$0xff]  }
  0xd0   : > { %v3314_v27 = vld [vmem:[%s4083_s19 + $0x8] sm:$0xff]   ;;  %v3318_v31 = vld [vmem:[%s4083_s19] sm:$0xff]  }
  0xd1   : > { %2740 = vmatpush3.bf16.msra.mxu0 %v3298_v11  ;;  %v3315_v28 = vld [vmem:[%s4083_s19 + $0x88] sm:$0xff]   ;;  %v3319_v32 = vld [vmem:[%s4083_s19 + $0x80] sm:$0xff]  }
  0xd2   : > { %2852 = vmatpush3.bf16.msra.mxu1 %v3299_v12  ;;  %2741 = vmatprep.subr.bf16.mxu0 %v3300_v13  ;;  %v3320_v33 = vld [vmem:[%s4075_s30] ss:$16 sps:$4 sm:$0xff]   ;;  %v3322_v34 = vld [vmem:[%s4075_s30 + $0x4] ss:$16 sps:$4 sm:$0xff]   ;;  %v3323_v35 = vld [vmem:[%s4075_s30 + $0x8] ss:$16 sps:$4 sm:$0xff]  }
  0xd3   : > { %2853 = vmatprep.subr.bf16.mxu1 %v3301_v14  ;;  %v3325_v36 = vld [vmem:[%s4075_s30 + $0xc] ss:$16 sps:$4 sm:$0xff]   ;;  %1165 = vmatprep.mubr.bf16.mxu0 %v3322_v34  ;;  %v3326_v37 = vld [vmem:[%s4075_s30 + $0x24] ss:$16 sps:$4 sm:$0xff]   ;;  %v3330_v39 = vld [vmem:[%s4075_s30 + $0x20] ss:$16 sps:$4 sm:$0xff]  }
  0xd4   : > { %1326 = vmatprep.mubr.bf16.mxu1 %v3325_v36  ;;  %v3328_v38 = vld [vmem:[%s4075_s30 + $0x2c] ss:$16 sps:$4 sm:$0xff]   ;;  %v3331_v40 = vld [vmem:[%s4075_s30 + $0x28] ss:$16 sps:$4 sm:$0xff]   ;;  %v3332_v41 = vld [vmem:[%s4075_s30 + $0x44] ss:$16 sps:$4 sm:$0xff]  }
  0xd5   : > { %2742 = vmatpush3.bf16.msra.mxu0 %v3302_v15  ;;  %v3334_v42 = vld [vmem:[%s4075_s30 + $0x4c] ss:$16 sps:$4 sm:$0xff]   ;;  %v3336_v43 = vld [vmem:[%s4075_s30 + $0x40] ss:$16 sps:$4 sm:$0xff]   ;;  %v3337_v44 = vld [vmem:[%s4075_s30 + $0x48] ss:$16 sps:$4 sm:$0xff]  }
  0xd6   : > { %2854 = vmatpush3.bf16.msra.mxu1 %v3303_v16  ;;  %2743 = vmatprep.subr.bf16.mxu0 %v3304_v17  ;;  %v3338_v45 = vld [vmem:[%s4075_s30 + $0x64] ss:$16 sps:$4 sm:$0xff]   ;;  %v3340_v46 = vld [vmem:[%s4075_s30 + $0x6c] ss:$16 sps:$4 sm:$0xff]   ;;  %v3342_v47 = vld [vmem:[%s4075_s30 + $0x60] ss:$16 sps:$4 sm:$0xff]  }
  0xd7   : > { %2855 = vmatprep.subr.bf16.mxu1 %v3305_v18  ;;  %v3343_v48 = vld [vmem:[%s4075_s30 + $0x68] ss:$16 sps:$4 sm:$0xff]   ;;  %v3344_v49 = vld [vmem:[%s4075_s30 + $0x84] ss:$16 sps:$4 sm:$0xff]   ;;  %v3346_v50 = vld [vmem:[%s4075_s30 + $0x8c] ss:$16 sps:$4 sm:$0xff]  }
  0xd8   : > { %v3348_v51 = vld [vmem:[%s4075_s30 + $0x80] ss:$16 sps:$4 sm:$0xff]   ;;  %v3349_v52 = vld [vmem:[%s4075_s30 + $0x88] ss:$16 sps:$4 sm:$0xff]   ;;  %v3350_v53 = vld [vmem:[%s4075_s30 + $0xa4] ss:$16 sps:$4 sm:$0xff]  }
  0xd9   : > { %2744 = vmatpush3.bf16.msra.mxu0 %v3306_v19  ;;  %v3352_v54 = vld [vmem:[%s4075_s30 + $0xac] ss:$16 sps:$4 sm:$0xff]   ;;  %v3354_v55 = vld [vmem:[%s4075_s30 + $0xa0] ss:$16 sps:$4 sm:$0xff]   ;;  %v3355_v56 = vld [vmem:[%s4075_s30 + $0xa8] ss:$16 sps:$4 sm:$0xff]  }
  0xda   : > { %2856 = vmatpush3.bf16.msra.mxu1 %v3307_v20  ;;  %2745 = vmatprep.subr.bf16.mxu0 %v3308_v21  ;;  %v3356_v57 = vld [vmem:[%s4075_s30 + $0xc4] ss:$16 sps:$4 sm:$0xff]   ;;  %v3358_v58 = vld [vmem:[%s4075_s30 + $0xcc] ss:$16 sps:$4 sm:$0xff]   ;;  %v3360_v59 = vld [vmem:[%s4075_s30 + $0xc0] ss:$16 sps:$4 sm:$0xff]  }
  0xdb   : > { %2857 = vmatprep.subr.bf16.mxu1 %v3309_v22  ;;  %v3361_v60 = vld [vmem:[%s4075_s30 + $0xc8] ss:$16 sps:$4 sm:$0xff]   ;;  %v3362_v61 = vld [vmem:[%s4075_s30 + $0xe4] ss:$16 sps:$4 sm:$0xff]   ;;  %v3364_v62 = vld [vmem:[%s4075_s30 + $0xec] ss:$16 sps:$4 sm:$0xff]  }
  0xdc   : > { %v3366_v63 = vld [vmem:[%s4075_s30 + $0xe0] ss:$16 sps:$4 sm:$0xff]   ;;  %v3367_v0 = vld [vmem:[%s4075_s30 + $0xe8] ss:$16 sps:$4 sm:$0xff]   ;;  %v3368_v1 = vld [vmem:[%s4075_s30 + $0x104] ss:$16 sps:$4 sm:$0xff]  }
  0xdd   : > { %2746 = vmatpush3.bf16.msra.mxu0 %v3310_v23  ;;  %v3370_v2 = vld [vmem:[%s4075_s30 + $0x10c] ss:$16 sps:$4 sm:$0xff]   ;;  %v3372_v3 = vld [vmem:[%s4075_s30 + $0x100] ss:$16 sps:$4 sm:$0xff]   ;;  %v3373_v4 = vld [vmem:[%s4075_s30 + $0x108] ss:$16 sps:$4 sm:$0xff]  }
  0xde   : > { %2858 = vmatpush3.bf16.msra.mxu1 %v3311_v24  ;;  %2747 = vmatprep.subr.bf16.mxu0 %v3312_v25  ;;  %v3374_v5 = vld [vmem:[%s4075_s30 + $0x124] ss:$16 sps:$4 sm:$0xff]   ;;  %v3376_v6 = vld [vmem:[%s4075_s30 + $0x12c] ss:$16 sps:$4 sm:$0xff]   ;;  %v3378_v7 = vld [vmem:[%s4075_s30 + $0x120] ss:$16 sps:$4 sm:$0xff]  }
  0xdf   : > { %2859 = vmatprep.subr.bf16.mxu1 %v3313_v26  ;;  %v3379_v8 = vld [vmem:[%s4075_s30 + $0x128] ss:$16 sps:$4 sm:$0xff]   ;;  %v3380_v9 = vld [vmem:[%s4075_s30 + $0x144] ss:$16 sps:$4 sm:$0xff]   ;;  %v3382_v10 = vld [vmem:[%s4075_s30 + $0x14c] ss:$16 sps:$4 sm:$0xff]  }
  0xe0   : > { %v3384_v11 = vld [vmem:[%s4075_s30 + $0x140] ss:$16 sps:$4 sm:$0xff]   ;;  %v3385_v12 = vld [vmem:[%s4075_s30 + $0x148] ss:$16 sps:$4 sm:$0xff]   ;;  %v3386_v13 = vld [vmem:[%s4075_s30 + $0x164] ss:$16 sps:$4 sm:$0xff]  }
  0xe1   : > { %2748 = vmatpush3.bf16.msra.mxu0 %v3314_v27  ;;  %v3388_v14 = vld [vmem:[%s4075_s30 + $0x16c] ss:$16 sps:$4 sm:$0xff]   ;;  %v3390_v15 = vld [vmem:[%s4075_s30 + $0x160] ss:$16 sps:$4 sm:$0xff]   ;;  %v3391_v16 = vld [vmem:[%s4075_s30 + $0x168] ss:$16 sps:$4 sm:$0xff]  }
  0xe2   : > { %2860 = vmatpush3.bf16.msra.mxu1 %v3315_v28  ;;  %2749 = vmatprep.subr.bf16.mxu0 %v3316_v29  ;;  %v3392_v17 = vld [vmem:[%s4075_s30 + $0x184] ss:$16 sps:$4 sm:$0xff]   ;;  %v3394_v18 = vld [vmem:[%s4075_s30 + $0x18c] ss:$16 sps:$4 sm:$0xff]   ;;  %v3396_v19 = vld [vmem:[%s4075_s30 + $0x180] ss:$16 sps:$4 sm:$0xff]  }
  0xe3   : > { %2861 = vmatprep.subr.bf16.mxu1 %v3317_v30  ;;  %v3397_v20 = vld [vmem:[%s4075_s30 + $0x188] ss:$16 sps:$4 sm:$0xff]   ;;  %v3398_v21 = vld [vmem:[%s4075_s30 + $0x1a4] ss:$16 sps:$4 sm:$0xff]   ;;  %v3400_v22 = vld [vmem:[%s4075_s30 + $0x1ac] ss:$16 sps:$4 sm:$0xff]  }
  0xe4   : > { %v3402_v23 = vld [vmem:[%s4075_s30 + $0x1a0] ss:$16 sps:$4 sm:$0xff]   ;;  %v3403_v24 = vld [vmem:[%s4075_s30 + $0x1a8] ss:$16 sps:$4 sm:$0xff]   ;;  %v3404_v25 = vld [vmem:[%s4075_s30 + $0x1c4] ss:$16 sps:$4 sm:$0xff]  }
  0xe5   : > { %2750 = vmatpush3.bf16.msra.mxu0 %v3318_v31  ;;  %v3406_v26 = vld [vmem:[%s4075_s30 + $0x1cc] ss:$16 sps:$4 sm:$0xff]   ;;  %v3408_v27 = vld [vmem:[%s4075_s30 + $0x1c0] ss:$16 sps:$4 sm:$0xff]   ;;  %v3409_v28 = vld [vmem:[%s4075_s30 + $0x1c8] ss:$16 sps:$4 sm:$0xff]  }
  0xe6   : > { %2862 = vmatpush3.bf16.msra.mxu1 %v3319_v32  ;;  %v3410_v29 = vld [vmem:[%s4075_s30 + $0x1e4] ss:$16 sps:$4 sm:$0xff]   ;;  %v3412_v30 = vld [vmem:[%s4075_s30 + $0x1ec] ss:$16 sps:$4 sm:$0xff]   ;;  %v3414_v31 = vld [vmem:[%s4075_s30 + $0x1e0] ss:$16 sps:$4 sm:$0xff]  }
  0xe7   : > { %v3415_v32 = vld [vmem:[%s4075_s30 + $0x1e8] ss:$16 sps:$4 sm:$0xff]  }
  0xe8   : > { %1166 = vmatmul.mubr.bf16.vlgmr.msra.gmra.mxu0 %v3320_v33 }
  0xe9   : > { %1327 = vmatmul.mubr.bf16.vlgmr.msra.gmra.mxu1 %v3323_v35  ;;  %1173 = vmatprep.mubr.bf16.mxu0 %v3326_v37 }
  0xea   : > { %1334 = vmatprep.mubr.bf16.mxu1 %v3328_v38 }
  0xf0   : > { %1174 = vmatmul.mubr.bf16.gmra.mxu0 %v3330_v39 }
  0xf1   : > { %1335 = vmatmul.mubr.bf16.gmra.mxu1 %v3331_v40  ;;  %1181 = vmatprep.mubr.bf16.mxu0 %v3332_v41  ;;  %v461_v40 = vld [vmem:[#allocation2 + $0xb0] sm:$0xff] }
  0xf2   : > { %1342 = vmatprep.mubr.bf16.mxu1 %v3334_v42 }
  0xf8   : > { %1182 = vmatmul.mubr.bf16.gmra.mxu0 %v3336_v43 }
  0xf9   : > { %1343 = vmatmul.mubr.bf16.gmra.mxu1 %v3337_v44  ;;  %1189 = vmatprep.mubr.bf16.mxu0 %v3338_v45 }
  0xfa   : > { %1350 = vmatprep.mubr.bf16.mxu1 %v3340_v46 }
 0x100   : > { %1190 = vmatmul.mubr.bf16.gmra.mxu0 %v3342_v47 }
 0x101   : > { %1351 = vmatmul.mubr.bf16.gmra.mxu1 %v3343_v48  ;;  %1197 = vmatprep.mubr.bf16.mxu0 %v3344_v49  ;;  %v462_v49 = vld [vmem:[#allocation2] sm:$0xff] }
 0x102   : > { %1358 = vmatprep.mubr.bf16.mxu1 %v3346_v50 }
 0x108   : > { %1198 = vmatmul.mubr.bf16.gmra.mxu0 %v3348_v51 }
 0x109   : > { %1359 = vmatmul.mubr.bf16.gmra.mxu1 %v3349_v52  ;;  %1205 = vmatprep.mubr.bf16.mxu0 %v3350_v53 }
 0x10a   : > { %1366 = vmatprep.mubr.bf16.mxu1 %v3352_v54 }
 0x110   : > { %1206 = vmatmul.mubr.bf16.gmra.mxu0 %v3354_v55 }
 0x111   : > { %1367 = vmatmul.mubr.bf16.gmra.mxu1 %v3355_v56  ;;  %1213 = vmatprep.mubr.bf16.mxu0 %v3356_v57 }
 0x112   : > { %1374 = vmatprep.mubr.bf16.mxu1 %v3358_v58  ;;  %v463_v58 = vld [vmem:[#allocation2 + $0xd8] sm:$0xff] }
 0x118   : > { %1214 = vmatmul.mubr.bf16.gmra.mxu0 %v3360_v59 }
 0x119   : > { %1375 = vmatmul.mubr.bf16.gmra.mxu1 %v3361_v60  ;;  %1221 = vmatprep.mubr.bf16.mxu0 %v3362_v61 }
 0x11a   : > { %1382 = vmatprep.mubr.bf16.mxu1 %v3364_v62 }
 0x120   : > { %1222 = vmatmul.mubr.bf16.gmra.mxu0 %v3366_v63 }
 0x121   : > { %1383 = vmatmul.mubr.bf16.gmra.mxu1 %v3367_v0  ;;  %1229 = vmatprep.mubr.bf16.mxu0 %v3368_v1 }
 0x122   : > { %1390 = vmatprep.mubr.bf16.mxu1 %v3370_v2 }
 0x128   : > { %1230 = vmatmul.mubr.bf16.gmra.mxu0 %v3372_v3  ;;  %v464_v3 = vld [vmem:[#allocation2 + $0x18] sm:$0xff] }
 0x129   : > { %1391 = vmatmul.mubr.bf16.gmra.mxu1 %v3373_v4  ;;  %1237 = vmatprep.mubr.bf16.mxu0 %v3374_v5 }
 0x12a   : > { %1398 = vmatprep.mubr.bf16.mxu1 %v3376_v6 }
 0x130   : > { %1238 = vmatmul.mubr.bf16.gmra.mxu0 %v3378_v7 }
 0x131   : > { %1399 = vmatmul.mubr.bf16.gmra.mxu1 %v3379_v8  ;;  %1245 = vmatprep.mubr.bf16.mxu0 %v3380_v9 }
 0x132   : > { %1406 = vmatprep.mubr.bf16.mxu1 %v3382_v10 }
 0x138   : > { %1246 = vmatmul.mubr.bf16.gmra.mxu0 %v3384_v11 }
 0x139   : > { %1407 = vmatmul.mubr.bf16.gmra.mxu1 %v3385_v12  ;;  %1253 = vmatprep.mubr.bf16.mxu0 %v3386_v13  ;;  %v465_v12 = vld [vmem:[#allocation2 + $0x50] sm:$0xff] }
 0x13a   : > { %1414 = vmatprep.mubr.bf16.mxu1 %v3388_v14 }
 0x140   : > { %1254 = vmatmul.mubr.bf16.gmra.mxu0 %v3390_v15 }
 0x141   : > { %1415 = vmatmul.mubr.bf16.gmra.mxu1 %v3391_v16  ;;  %1261 = vmatprep.mubr.bf16.mxu0 %v3392_v17 }
 0x142   : > { %1422 = vmatprep.mubr.bf16.mxu1 %v3394_v18 }
 0x148   : > { %1262 = vmatmul.mubr.bf16.gmra.mxu0 %v3396_v19 }
 0x149   : > { %1423 = vmatmul.mubr.bf16.gmra.mxu1 %v3397_v20  ;;  %1269 = vmatprep.mubr.bf16.mxu0 %v3398_v21  ;;  %v466_v21 = vld [vmem:[#allocation2 + $0x68] sm:$0xff] }
 0x14a   : > { %1430 = vmatprep.mubr.bf16.mxu1 %v3400_v22 }
 0x150   : > { %1270 = vmatmul.mubr.bf16.gmra.mxu0 %v3402_v23 }
 0x151   : > { %1431 = vmatmul.mubr.bf16.gmra.mxu1 %v3403_v24  ;;  %1277 = vmatprep.mubr.bf16.mxu0 %v3404_v25 }
 0x152   : > { %1438 = vmatprep.mubr.bf16.mxu1 %v3406_v26 }
 0x158   : > { %1278 = vmatmul.mubr.bf16.gmra.mxu0 %v3408_v27 }
 0x159   : > { %1439 = vmatmul.mubr.bf16.gmra.mxu1 %v3409_v28  ;;  %1285 = vmatprep.mubr.bf16.mxu0 %v3410_v29 }
 0x15a   : > { %1446 = vmatprep.mubr.bf16.mxu1 %v3412_v30  ;;  %v467_v30 = vld [vmem:[#allocation2 + $0x30] sm:$0xff] }
 0x160   : > { %1286 = vmatmul.mubr.bf16.gmra.mxu0 %v3414_v31 }
 0x161   : > { %1447 = vmatmul.mubr.bf16.gmra.mxu1 %v3415_v32 }
 0x1a8   : > { %v2751_v33 = vpop.f32.mrf.mxu0 }
 0x1a9   : > { %v2863_v34 = vpop.f32.mrf.mxu1 }
 0x1aa   : > { %v2752_v35 = vpop.f32.mrf.mxu0 }
 0x1ab   : > { %v2753_v36 = vadd.f32 %v2752_v35, %v2751_v33  ;;  %v2864_v37 = vpop.f32.mrf.mxu1 }
 0x1ac   : > { %v2865_v38 = vadd.f32 %v2864_v37, %v2863_v34  ;;  %v2754_v39 = vpop.f32.mrf.mxu0 }
 0x1ad   : > { %v2866_v41 = vpop.f32.mrf.mxu1 }
 0x1ae   : > { %v1329_v42 = vadd.f32 %v2865_v38, %v2753_v36  ;;  %v2755_v43 = vpop.f32.mrf.mxu0 }
 0x1af   : > { %v2756_v44 = vadd.f32 %v2755_v43, %v2754_v39  ;;  %v2867_v45 = vpop.f32.mrf.mxu1  ;;  %v468_v39 = vld [vmem:[#allocation2 + $0x48] sm:$0xff] }
 0x1b0   : > { %v1455_v46 = vadd.f32 %v1329_v42, %v461_v40  ;;  %v2868_v47 = vadd.f32 %v2867_v45, %v2866_v41  ;;  %v2757_v48 = vpop.f32.mrf.mxu0 }
 0x1b1   : > { %v2869_v50 = vpop.f32.mrf.mxu1 }
 0x1b2   : > { %1487 = vst [vmem:[#allocation2 + $0xb0] sm:$0xff] %v1455_v46  ;;  %v1332_v51 = vadd.f32 %v2868_v47, %v2756_v44  ;;  %v2758_v52 = vpop.f32.mrf.mxu0 }
 0x1b3   : > { %v2759_v53 = vadd.f32 %v2758_v52, %v2757_v48  ;;  %v2870_v54 = vpop.f32.mrf.mxu1  ;;  %v469_v48 = vld [vmem:[#allocation2 + $0x80] sm:$0xff] }
 0x1b4   : > { %v1456_v55 = vadd.f32 %v1332_v51, %v462_v49  ;;  %v2871_v56 = vadd.f32 %v2870_v54, %v2869_v50  ;;  %v2760_v57 = vpop.f32.mrf.mxu0 }
 0x1b5   : > { %v2872_v59 = vpop.f32.mrf.mxu1 }
 0x1b6   : > { %1488 = vst [vmem:[#allocation2] sm:$0xff] %v1456_v55  ;;  %v1337_v60 = vadd.f32 %v2871_v56, %v2759_v53  ;;  %v2761_v61 = vpop.f32.mrf.mxu0 }
 0x1b7   : > { %v2762_v62 = vadd.f32 %v2761_v61, %v2760_v57  ;;  %v2873_v63 = vpop.f32.mrf.mxu1  ;;  %v470_v57 = vld [vmem:[#allocation2 + $0x88] sm:$0xff] }
 0x1b8   : > { %v1457_v0 = vadd.f32 %v1337_v60, %v463_v58  ;;  %v2874_v1 = vadd.f32 %v2873_v63, %v2872_v59  ;;  %v2763_v2 = vpop.f32.mrf.mxu0 }
 0x1b9   : > { %v2875_v4 = vpop.f32.mrf.mxu1 }
 0x1ba   : > { %1489 = vst [vmem:[#allocation2 + $0xd8] sm:$0xff] %v1457_v0  ;;  %v1340_v5 = vadd.f32 %v2874_v1, %v2762_v62  ;;  %v2764_v6 = vpop.f32.mrf.mxu0 }
 0x1bb   : > { %v2765_v7 = vadd.f32 %v2764_v6, %v2763_v2  ;;  %v2876_v8 = vpop.f32.mrf.mxu1  ;;  %v471_v2 = vld [vmem:[#allocation2 + $0xe8] sm:$0xff] }
 0x1bc   : > { %v1458_v9 = vadd.f32 %v1340_v5, %v464_v3  ;;  %v2877_v10 = vadd.f32 %v2876_v8, %v2875_v4  ;;  %v2766_v11 = vpop.f32.mrf.mxu0 }
 0x1bd   : > { %v2878_v13 = vpop.f32.mrf.mxu1 }
 0x1be   : > { %1490 = vst [vmem:[#allocation2 + $0x18] sm:$0xff] %v1458_v9  ;;  %v1345_v14 = vadd.f32 %v2877_v10, %v2765_v7  ;;  %v2767_v15 = vpop.f32.mrf.mxu0 }
 0x1bf   : > { %v2768_v16 = vadd.f32 %v2767_v15, %v2766_v11  ;;  %v2879_v17 = vpop.f32.mrf.mxu1  ;;  %v472_v11 = vld [vmem:[#allocation2 + $0xb8] sm:$0xff] }
 0x1c0   : > { %v1459_v18 = vadd.f32 %v1345_v14, %v465_v12  ;;  %v2880_v19 = vadd.f32 %v2879_v17, %v2878_v13  ;;  %v2769_v20 = vpop.f32.mrf.mxu0 }
 0x1c1   : > { %v2881_v22 = vpop.f32.mrf.mxu1 }
 0x1c2   : > { %1491 = vst [vmem:[#allocation2 + $0x50] sm:$0xff] %v1459_v18  ;;  %v1348_v23 = vadd.f32 %v2880_v19, %v2768_v16  ;;  %v2770_v24 = vpop.f32.mrf.mxu0 }
 0x1c3   : > { %v2771_v25 = vadd.f32 %v2770_v24, %v2769_v20  ;;  %v2882_v26 = vpop.f32.mrf.mxu1  ;;  %v473_v20 = vld [vmem:[#allocation2 + $0x60] sm:$0xff] }
 0x1c4   : > { %v1460_v27 = vadd.f32 %v1348_v23, %v466_v21  ;;  %v2883_v28 = vadd.f32 %v2882_v26, %v2881_v22  ;;  %v2772_v29 = vpop.f32.mrf.mxu0 }
 0x1c5   : > { %v2884_v31 = vpop.f32.mrf.mxu1 }
 0x1c6   : > { %1492 = vst [vmem:[#allocation2 + $0x68] sm:$0xff] %v1460_v27  ;;  %v1353_v32 = vadd.f32 %v2883_v28, %v2771_v25  ;;  %v2773_v33 = vpop.f32.mrf.mxu0 }
 0x1c7   : > { %v2774_v34 = vadd.f32 %v2773_v33, %v2772_v29  ;;  %v2885_v35 = vpop.f32.mrf.mxu1  ;;  %v474_v29 = vld [vmem:[#allocation2 + $0xf0] sm:$0xff] }
 0x1c8   : > { %v1461_v36 = vadd.f32 %v1353_v32, %v467_v30  ;;  %v2886_v37 = vadd.f32 %v2885_v35, %v2884_v31  ;;  %v2775_v38 = vpop.f32.mrf.mxu0 }
 0x1c9   : > { %v2887_v40 = vpop.f32.mrf.mxu1 }
 0x1ca   : > { %1493 = vst [vmem:[#allocation2 + $0x30] sm:$0xff] %v1461_v36  ;;  %v1356_v41 = vadd.f32 %v2886_v37, %v2774_v34  ;;  %v2776_v42 = vpop.f32.mrf.mxu0 }
 0x1cb   : > { %v2777_v43 = vadd.f32 %v2776_v42, %v2775_v38  ;;  %v2888_v44 = vpop.f32.mrf.mxu1  ;;  %v475_v38 = vld [vmem:[#allocation2 + $0x8] sm:$0xff] }
 0x1cc   : > { %v1462_v45 = vadd.f32 %v1356_v41, %v468_v39  ;;  %v2889_v46 = vadd.f32 %v2888_v44, %v2887_v40  ;;  %v2778_v47 = vpop.f32.mrf.mxu0 }
 0x1cd   : > { %v2890_v49 = vpop.f32.mrf.mxu1 }
 0x1ce   : > { %1494 = vst [vmem:[#allocation2 + $0x48] sm:$0xff] %v1462_v45  ;;  %v1361_v50 = vadd.f32 %v2889_v46, %v2777_v43  ;;  %v2779_v51 = vpop.f32.mrf.mxu0 }
 0x1cf   : > { %v2780_v52 = vadd.f32 %v2779_v51, %v2778_v47  ;;  %v2891_v53 = vpop.f32.mrf.mxu1  ;;  %v476_v47 = vld [vmem:[#allocation2 + $0x78] sm:$0xff] }
 0x1d0   : > { %v1463_v54 = vadd.f32 %v1361_v50, %v469_v48  ;;  %v2892_v55 = vadd.f32 %v2891_v53, %v2890_v49  ;;  %v2781_v56 = vpop.f32.mrf.mxu0 }
 0x1d1   : > { %v2893_v58 = vpop.f32.mrf.mxu1 }
 0x1d2   : > { %1495 = vst [vmem:[#allocation2 + $0x80] sm:$0xff] %v1463_v54  ;;  %v1364_v59 = vadd.f32 %v2892_v55, %v2780_v52  ;;  %v2782_v60 = vpop.f32.mrf.mxu0 }
 0x1d3   : > { %v2783_v61 = vadd.f32 %v2782_v60, %v2781_v56  ;;  %v2894_v62 = vpop.f32.mrf.mxu1  ;;  %v477_v56 = vld [vmem:[#allocation2 + $0x38] sm:$0xff] }
 0x1d4   : > { %v1464_v63 = vadd.f32 %v1364_v59, %v470_v57  ;;  %v2895_v0 = vadd.f32 %v2894_v62, %v2893_v58  ;;  %v2784_v1 = vpop.f32.mrf.mxu0 }
 0x1d5   : > { %v2896_v3 = vpop.f32.mrf.mxu1 }
 0x1d6   : > { %1496 = vst [vmem:[#allocation2 + $0x88] sm:$0xff] %v1464_v63  ;;  %v1369_v4 = vadd.f32 %v2895_v0, %v2783_v61  ;;  %v2785_v5 = vpop.f32.mrf.mxu0 }
 0x1d7   : > { %v2786_v6 = vadd.f32 %v2785_v5, %v2784_v1  ;;  %v2897_v7 = vpop.f32.mrf.mxu1  ;;  %v478_v1 = vld [vmem:[#allocation2 + $0x58] sm:$0xff] }
 0x1d8   : > { %v1465_v8 = vadd.f32 %v1369_v4, %v471_v2  ;;  %v2898_v9 = vadd.f32 %v2897_v7, %v2896_v3  ;;  %v2787_v10 = vpop.f32.mrf.mxu0 }
 0x1d9   : > { %v2899_v12 = vpop.f32.mrf.mxu1 }
 0x1da   : > { %1497 = vst [vmem:[#allocation2 + $0xe8] sm:$0xff] %v1465_v8  ;;  %v1372_v13 = vadd.f32 %v2898_v9, %v2786_v6  ;;  %v2788_v14 = vpop.f32.mrf.mxu0 }
 0x1db   : > { %v2789_v15 = vadd.f32 %v2788_v14, %v2787_v10  ;;  %v2900_v16 = vpop.f32.mrf.mxu1  ;;  %v479_v10 = vld [vmem:[#allocation2 + $0x40] sm:$0xff] }
 0x1dc   : > { %v1466_v17 = vadd.f32 %v1372_v13, %v472_v11  ;;  %v2901_v18 = vadd.f32 %v2900_v16, %v2899_v12  ;;  %v2790_v19 = vpop.f32.mrf.mxu0 }
 0x1dd   : > { %v2902_v21 = vpop.f32.mrf.mxu1 }
 0x1de   : > { %1498 = vst [vmem:[#allocation2 + $0xb8] sm:$0xff] %v1466_v17  ;;  %v1377_v22 = vadd.f32 %v2901_v18, %v2789_v15  ;;  %v2791_v23 = vpop.f32.mrf.mxu0 }
 0x1df   : > { %v2792_v24 = vadd.f32 %v2791_v23, %v2790_v19  ;;  %v2903_v25 = vpop.f32.mrf.mxu1  ;;  %v480_v19 = vld [vmem:[#allocation2 + $0xc8] sm:$0xff] }
 0x1e0   : > { %v1467_v26 = vadd.f32 %v1377_v22, %v473_v20  ;;  %v2904_v27 = vadd.f32 %v2903_v25, %v2902_v21  ;;  %v2793_v28 = vpop.f32.mrf.mxu0 }
 0x1e1   : > { %v2905_v30 = vpop.f32.mrf.mxu1 }
 0x1e2   : > { %1499 = vst [vmem:[#allocation2 + $0x60] sm:$0xff] %v1467_v26  ;;  %v1380_v31 = vadd.f32 %v2904_v27, %v2792_v24  ;;  %v2794_v32 = vpop.f32.mrf.mxu0 }
 0x1e3   : > { %v2795_v33 = vadd.f32 %v2794_v32, %v2793_v28  ;;  %v2906_v34 = vpop.f32.mrf.mxu1  ;;  %v481_v28 = vld [vmem:[#allocation2 + $0xe0] sm:$0xff] }
 0x1e4   : > { %v1468_v35 = vadd.f32 %v1380_v31, %v474_v29  ;;  %v2907_v36 = vadd.f32 %v2906_v34, %v2905_v30  ;;  %v2796_v37 = vpop.f32.mrf.mxu0 }
 0x1e5   : > { %v2908_v39 = vpop.f32.mrf.mxu1 }
 0x1e6   : > { %1500 = vst [vmem:[#allocation2 + $0xf0] sm:$0xff] %v1468_v35  ;;  %v1385_v40 = vadd.f32 %v2907_v36, %v2795_v33  ;;  %v2797_v41 = vpop.f32.mrf.mxu0 }
 0x1e7   : > { %v2798_v42 = vadd.f32 %v2797_v41, %v2796_v37  ;;  %v2909_v43 = vpop.f32.mrf.mxu1  ;;  %v482_v37 = vld [vmem:[#allocation2 + $0x90] sm:$0xff] }
 0x1e8   : > { %v1469_v44 = vadd.f32 %v1385_v40, %v475_v38  ;;  %v2910_v45 = vadd.f32 %v2909_v43, %v2908_v39  ;;  %v2799_v46 = vpop.f32.mrf.mxu0 }
 0x1e9   : > { %v2911_v48 = vpop.f32.mrf.mxu1 }
 0x1ea   : > { %1501 = vst [vmem:[#allocation2 + $0x8] sm:$0xff] %v1469_v44  ;;  %v1388_v49 = vadd.f32 %v2910_v45, %v2798_v42  ;;  %v2800_v50 = vpop.f32.mrf.mxu0 }
 0x1eb   : > { %v2801_v51 = vadd.f32 %v2800_v50, %v2799_v46  ;;  %v2912_v52 = vpop.f32.mrf.mxu1  ;;  %v483_v46 = vld [vmem:[#allocation2 + $0x70] sm:$0xff] }
 0x1ec   : > { %v1470_v53 = vadd.f32 %v1388_v49, %v476_v47  ;;  %v2913_v54 = vadd.f32 %v2912_v52, %v2911_v48  ;;  %v2802_v55 = vpop.f32.mrf.mxu0 }
 0x1ed   : > { %v2914_v57 = vpop.f32.mrf.mxu1 }
 0x1ee   : > { %1502 = vst [vmem:[#allocation2 + $0x78] sm:$0xff] %v1470_v53  ;;  %v1393_v58 = vadd.f32 %v2913_v54, %v2801_v51  ;;  %v2803_v59 = vpop.f32.mrf.mxu0 }
 0x1ef   : > { %v2804_v60 = vadd.f32 %v2803_v59, %v2802_v55  ;;  %v2915_v61 = vpop.f32.mrf.mxu1  ;;  %v484_v55 = vld [vmem:[#allocation2 + $0xc0] sm:$0xff] }
 0x1f0   : > { %v1471_v62 = vadd.f32 %v1393_v58, %v477_v56  ;;  %v2916_v63 = vadd.f32 %v2915_v61, %v2914_v57  ;;  %v2805_v0 = vpop.f32.mrf.mxu0 }
 0x1f1   : > { %v2917_v2 = vpop.f32.mrf.mxu1 }
 0x1f2   : > { %1503 = vst [vmem:[#allocation2 + $0x38] sm:$0xff] %v1471_v62  ;;  %v1396_v3 = vadd.f32 %v2916_v63, %v2804_v60  ;;  %v2806_v4 = vpop.f32.mrf.mxu0 }
 0x1f3   : > { %v2807_v5 = vadd.f32 %v2806_v4, %v2805_v0  ;;  %v2918_v6 = vpop.f32.mrf.mxu1  ;;  %v485_v0 = vld [vmem:[#allocation2 + $0xa8] sm:$0xff] }
 0x1f4   : > { %v1472_v7 = vadd.f32 %v1396_v3, %v478_v1  ;;  %v2919_v8 = vadd.f32 %v2918_v6, %v2917_v2  ;;  %v2808_v9 = vpop.f32.mrf.mxu0 }
 0x1f5   : > { %v2920_v11 = vpop.f32.mrf.mxu1 }
 0x1f6   : > { %1504 = vst [vmem:[#allocation2 + $0x58] sm:$0xff] %v1472_v7  ;;  %v1401_v12 = vadd.f32 %v2919_v8, %v2807_v5  ;;  %v2809_v13 = vpop.f32.mrf.mxu0 }
 0x1f7   : > { %v2810_v14 = vadd.f32 %v2809_v13, %v2808_v9  ;;  %v2921_v15 = vpop.f32.mrf.mxu1  ;;  %v486_v9 = vld [vmem:[#allocation2 + $0xd0] sm:$0xff] }
 0x1f8   : > { %v1473_v16 = vadd.f32 %v1401_v12, %v479_v10  ;;  %v2922_v17 = vadd.f32 %v2921_v15, %v2920_v11  ;;  %v2811_v18 = vpop.f32.mrf.mxu0 }
 0x1f9   : > { %v2923_v20 = vpop.f32.mrf.mxu1 }
 0x1fa   : > { %1505 = vst [vmem:[#allocation2 + $0x40] sm:$0xff] %v1473_v16  ;;  %v1404_v21 = vadd.f32 %v2922_v17, %v2810_v14  ;;  %v2812_v22 = vpop.f32.mrf.mxu0 }
 0x1fb   : > { %v2813_v23 = vadd.f32 %v2812_v22, %v2811_v18  ;;  %v2924_v24 = vpop.f32.mrf.mxu1  ;;  %v487_v18 = vld [vmem:[#allocation2 + $0x10] sm:$0xff] }
 0x1fc   : > { %v1474_v25 = vadd.f32 %v1404_v21, %v480_v19  ;;  %v2925_v26 = vadd.f32 %v2924_v24, %v2923_v20  ;;  %v2814_v27 = vpop.f32.mrf.mxu0 }
 0x1fd   : > { %v2926_v29 = vpop.f32.mrf.mxu1 }
 0x1fe   : > { %1506 = vst [vmem:[#allocation2 + $0xc8] sm:$0xff] %v1474_v25  ;;  %v1409_v30 = vadd.f32 %v2925_v26, %v2813_v23  ;;  %v2815_v31 = vpop.f32.mrf.mxu0 }
 0x1ff   : > { %v2816_v32 = vadd.f32 %v2815_v31, %v2814_v27  ;;  %v2927_v33 = vpop.f32.mrf.mxu1  ;;  %v488_v27 = vld [vmem:[#allocation2 + $0x28] sm:$0xff] }
 0x200   : > { %v1475_v34 = vadd.f32 %v1409_v30, %v481_v28  ;;  %v2928_v35 = vadd.f32 %v2927_v33, %v2926_v29  ;;  %v2817_v36 = vpop.f32.mrf.mxu0 }
 0x201   : > { %v2929_v38 = vpop.f32.mrf.mxu1 }
 0x202   : > { %1507 = vst [vmem:[#allocation2 + $0xe0] sm:$0xff] %v1475_v34  ;;  %v1412_v39 = vadd.f32 %v2928_v35, %v2816_v32  ;;  %v2818_v40 = vpop.f32.mrf.mxu0 }
 0x203   : > { %v2819_v41 = vadd.f32 %v2818_v40, %v2817_v36  ;;  %v2930_v42 = vpop.f32.mrf.mxu1  ;;  %v489_v36 = vld [vmem:[#allocation2 + $0xa0] sm:$0xff] }
 0x204   : > { %v1476_v43 = vadd.f32 %v1412_v39, %v482_v37  ;;  %v2931_v44 = vadd.f32 %v2930_v42, %v2929_v38  ;;  %v2820_v45 = vpop.f32.mrf.mxu0 }
 0x205   : > { %v2932_v47 = vpop.f32.mrf.mxu1 }
 0x206   : > { %1508 = vst [vmem:[#allocation2 + $0x90] sm:$0xff] %v1476_v43  ;;  %v1417_v48 = vadd.f32 %v2931_v44, %v2819_v41  ;;  %v2821_v49 = vpop.f32.mrf.mxu0 }
 0x207   : > { %v2822_v50 = vadd.f32 %v2821_v49, %v2820_v45  ;;  %v2933_v51 = vpop.f32.mrf.mxu1  ;;  %v490_v45 = vld [vmem:[#allocation2 + $0xf8] sm:$0xff] }
 0x208   : > { %v1477_v52 = vadd.f32 %v1417_v48, %v483_v46  ;;  %v2934_v53 = vadd.f32 %v2933_v51, %v2932_v47  ;;  %v2823_v54 = vpop.f32.mrf.mxu0 }
 0x209   : > { %v2935_v56 = vpop.f32.mrf.mxu1 }
 0x20a   : > { %1509 = vst [vmem:[#allocation2 + $0x70] sm:$0xff] %v1477_v52  ;;  %v1420_v57 = vadd.f32 %v2934_v53, %v2822_v50  ;;  %v2824_v58 = vpop.f32.mrf.mxu0 }
 0x20b   : > { %v2825_v59 = vadd.f32 %v2824_v58, %v2823_v54  ;;  %v2936_v60 = vpop.f32.mrf.mxu1  ;;  %v491_v54 = vld [vmem:[#allocation2 + $0x20] sm:$0xff] }
 0x20c   : > { %v1478_v61 = vadd.f32 %v1420_v57, %v484_v55  ;;  %v2937_v62 = vadd.f32 %v2936_v60, %v2935_v56  ;;  %v2826_v63 = vpop.f32.mrf.mxu0 }
 0x20d   : > { %v2938_v1 = vpop.f32.mrf.mxu1 }
 0x20e   : > { %1510 = vst [vmem:[#allocation2 + $0xc0] sm:$0xff] %v1478_v61  ;;  %v1425_v2 = vadd.f32 %v2937_v62, %v2825_v59  ;;  %v2827_v3 = vpop.f32.mrf.mxu0  ;;  %v492_v62 = vld [vmem:[#allocation2 + $0x98] sm:$0xff] }
 0x20f   : > { %v2828_v4 = vadd.f32 %v2827_v3, %v2826_v63  ;;  %v2939_v5 = vpop.f32.mrf.mxu1 }
 0x210   : > { %v1479_v6 = vadd.f32 %v1425_v2, %v485_v0  ;;  %v2940_v7 = vadd.f32 %v2939_v5, %v2938_v1  ;;  %v2829_v8 = vpop.f32.mrf.mxu0 }
 0x211   : > { %v2941_v10 = vpop.f32.mrf.mxu1 }
 0x212   : > { %1511 = vst [vmem:[#allocation2 + $0xa8] sm:$0xff] %v1479_v6  ;;  %v1428_v11 = vadd.f32 %v2940_v7, %v2828_v4  ;;  %v2830_v12 = vpop.f32.mrf.mxu0 }
 0x213   : > { %v2831_v13 = vadd.f32 %v2830_v12, %v2829_v8  ;;  %v2942_v14 = vpop.f32.mrf.mxu1 }
 0x214   : > { %v1480_v15 = vadd.f32 %v1428_v11, %v486_v9  ;;  %v2943_v16 = vadd.f32 %v2942_v14, %v2941_v10  ;;  %v2832_v17 = vpop.f32.mrf.mxu0 }
 0x215   : > { %v2944_v19 = vpop.f32.mrf.mxu1 }
 0x216   : > { %1512 = vst [vmem:[#allocation2 + $0xd0] sm:$0xff] %v1480_v15  ;;  %v1433_v20 = vadd.f32 %v2943_v16, %v2831_v13  ;;  %v2833_v21 = vpop.f32.mrf.mxu0 }
 0x217   : > { %v2834_v22 = vadd.f32 %v2833_v21, %v2832_v17  ;;  %v2945_v23 = vpop.f32.mrf.mxu1 }
 0x218   : > { %v1481_v24 = vadd.f32 %v1433_v20, %v487_v18  ;;  %v2946_v25 = vadd.f32 %v2945_v23, %v2944_v19  ;;  %v2835_v26 = vpop.f32.mrf.mxu0 }
 0x219   : > { %v2947_v28 = vpop.f32.mrf.mxu1 }
 0x21a   : > { %1513 = vst [vmem:[#allocation2 + $0x10] sm:$0xff] %v1481_v24  ;;  %v1436_v29 = vadd.f32 %v2946_v25, %v2834_v22  ;;  %v2836_v30 = vpop.f32.mrf.mxu0 }
 0x21b   : > { %v2837_v31 = vadd.f32 %v2836_v30, %v2835_v26  ;;  %v2948_v32 = vpop.f32.mrf.mxu1 }
 0x21c   : > { %v1482_v33 = vadd.f32 %v1436_v29, %v488_v27  ;;  %v2949_v34 = vadd.f32 %v2948_v32, %v2947_v28  ;;  %v2838_v35 = vpop.f32.mrf.mxu0 }
 0x21d   : > { %v2950_v37 = vpop.f32.mrf.mxu1 }
 0x21e   : > { %1514 = vst [vmem:[#allocation2 + $0x28] sm:$0xff] %v1482_v33  ;;  %v1441_v38 = vadd.f32 %v2949_v34, %v2837_v31  ;;  %v2839_v39 = vpop.f32.mrf.mxu0 }
 0x21f   : > { %v2840_v40 = vadd.f32 %v2839_v39, %v2838_v35  ;;  %v2951_v41 = vpop.f32.mrf.mxu1 }
 0x220   : > { %v1483_v42 = vadd.f32 %v1441_v38, %v489_v36  ;;  %v2952_v43 = vadd.f32 %v2951_v41, %v2950_v37  ;;  %v2841_v44 = vpop.f32.mrf.mxu0 }
 0x221   : > { %v2953_v46 = vpop.f32.mrf.mxu1 }
 0x222   : > { %1515 = vst [vmem:[#allocation2 + $0xa0] sm:$0xff] %v1483_v42  ;;  %v1444_v47 = vadd.f32 %v2952_v43, %v2840_v40  ;;  %v2842_v48 = vpop.f32.mrf.mxu0 }
 0x223   : > { %v2843_v49 = vadd.f32 %v2842_v48, %v2841_v44  ;;  %v2954_v50 = vpop.f32.mrf.mxu1 }
 0x224   : > { %v1484_v51 = vadd.f32 %v1444_v47, %v490_v45  ;;  %v2955_v52 = vadd.f32 %v2954_v50, %v2953_v46  ;;  %v2844_v53 = vpop.f32.mrf.mxu0 }
 0x225   : > { %v2956_v55 = vpop.f32.mrf.mxu1 }
 0x226   : > { %1516 = vst [vmem:[#allocation2 + $0xf8] sm:$0xff] %v1484_v51  ;;  %v1449_v56 = vadd.f32 %v2955_v52, %v2843_v49  ;;  %v2845_v57 = vpop.f32.mrf.mxu0 }
 0x227   : > { %v2846_v58 = vadd.f32 %v2845_v57, %v2844_v53  ;;  %v2957_v59 = vpop.f32.mrf.mxu1 }
 0x228   : > { %v1485_v60 = vadd.f32 %v1449_v56, %v491_v54  ;;  %v2958_v61 = vadd.f32 %v2957_v59, %v2956_v55 }
 0x22a   : > { %1517 = vst [vmem:[#allocation2 + $0x20] sm:$0xff] %v1485_v60  ;;  %v1452_v63 = vadd.f32 %v2958_v61, %v2846_v58  ;;  %1522 = sbr.rel (%p2699_p10) target bundleno = 1061 (0x425), region = 76 }
 0x22c   : > { %v1486_v0 = vadd.f32 %v1452_v63, %v492_v62 }
 0x22e   : > { %1518 = vst [vmem:[#allocation2 + $0x98] sm:$0xff] %v1486_v0 }
 0x22f   : > { %v3416_v1 = vld [vmem:[#allocation8 + $0x38] sm:$0xff]   ;;  %v3417_v2 = vld [vmem:[#allocation8 + $0x30] sm:$0xff]   ;;  %v3418_v3 = vld [vmem:[#allocation8 + $0x28] sm:$0xff]  }
 0x230   : > { %3007 = vmatprep.subr.bf16.mxu0 %v3416_v1  ;;  %v3419_v4 = vld [vmem:[#allocation8 + $0x20] sm:$0xff]   ;;  %v1523_v5 = vld [vmem:[#allocation2 + $0xb0] sm:$0xff]  ;;  %v1525_v13 = vld [vmem:[#allocation2 + $0xd8] sm:$0xff] }
 0x231   : > { %3008 = vmatpush3.bf16.msra.mxu0 %v3416_v1  ;;  %v1524_v6 = vld [vmem:[#allocation2] sm:$0xff]  ;;  %v1526_v14 = vld [vmem:[#allocation2 + $0x18] sm:$0xff]  ;;  %v1527_v15 = vld [vmem:[#allocation2 + $0x50] sm:$0xff] }
 0x232   : > { %3009 = vmatprep.subr.bf16.mxu0 %v3417_v2  ;;  %v4207_v7 = vld [vmem:[#allocation9] ss:$0 sm:$0xff]  ;;  %v4211_v10 = vld [vmem:[#allocation9 + $0x1] ss:$0 sm:$0xff]  ;;  %v3420_v16 = vld [vmem:[#allocation8 + $0x18] sm:$0xff]  }
 0x233   : > { %v1560_v8 = vadd.f32 %v4207_v7, %v1523_v5  ;;  %v1561_v9 = vadd.f32 %v4207_v7, %v1524_v6  ;;  %v4213_v17 = vld [vmem:[#allocation9 + $0x2] ss:$0 sm:$0xff]  ;;  %v1528_v18 = vld [vmem:[#allocation2 + $0x68] sm:$0xff]  ;;  %v1562_v21 = vadd.f32 %v4207_v7, %v1525_v13  ;;  %v1563_v22 = vadd.f32 %v4207_v7, %v1526_v14  ;;  %v3421_v27 = vld [vmem:[#allocation8 + $0x10] sm:$0xff]  }
 0x234   : > { %v1564_v23 = vadd.f32 %v4207_v7, %v1527_v15  ;;  %v1565_v26 = vadd.f32 %v4207_v7, %v1528_v18  ;;  %v1529_v28 = vld [vmem:[#allocation2 + $0x30] sm:$0xff]  ;;  %v1530_v30 = vld [vmem:[#allocation2 + $0x48] sm:$0xff]  ;;  %v1531_v37 = vld [vmem:[#allocation2 + $0x80] sm:$0xff] }
 0x235   : > { %3010 = vmatpush3.bf16.msra.mxu0 %v3417_v2  ;;  %v1592_v11 = vmax.f32 %v1560_v8, 0.0  ;;  %v1593_v12 = vmax.f32 %v1561_v9, 0.0  ;;  %v3422_v31 = vld [vmem:[#allocation8 + $0x8] sm:$0xff]   ;;  %v1594_v32 = vmax.f32 %v1562_v21, 0.0  ;;  %v1595_v33 = vmax.f32 %v1563_v22, 0.0  ;;  %v3424_v40 = vld [vmem:[#allocation11 + $0x38] sm:$0xff]  }
 0x236   : > { %3011 = vmatprep.subr.bf16.mxu0 %v3418_v3  ;;  %v1596_v34 = vmax.f32 %v1564_v23, 0.0  ;;  %v1597_v35 = vmax.f32 %v1565_v26, 0.0  ;;  %v1566_v36 = vadd.f32 %v4207_v7, %v1529_v28  ;;  %v1532_v38 = vld [vmem:[#allocation2 + $0x88] sm:$0xff]  ;;  %v1567_v39 = vadd.f32 %v4207_v7, %v1530_v30  ;;  %v3425_v41 = vld [vmem:[#allocation11 + $0x30] sm:$0xff]   ;;  %3055 = vmatprep.subr.bf16.mxu1 %v3424_v40  ;;  %v3423_v45 = vld [vmem:[#allocation8] sm:$0xff]  }
 0x237   : > { %v1629_v19 = vmul.f32 %v4211_v10, %v1592_v11  ;;  %v1630_v20 = vmul.f32 %v4211_v10, %v1593_v12  ;;  %v1631_v42 = vmul.f32 %v4211_v10, %v1594_v32  ;;  %v1632_v43 = vmul.f32 %v4211_v10, %v1595_v33  ;;  %3056 = vmatpush3.bf16.msra.mxu1 %v3424_v40  ;;  %v1533_v51 = vld [vmem:[#allocation2 + $0xe8] sm:$0xff]  ;;  %v1534_v52 = vld [vmem:[#allocation2 + $0xb8] sm:$0xff]  ;;  %v1535_v53 = vld [vmem:[#allocation2 + $0x60] sm:$0xff] }
 0x238   : > { %v1633_v44 = vmul.f32 %v4211_v10, %v1596_v34  ;;  %v1634_v46 = vmul.f32 %v4211_v10, %v1597_v35  ;;  %v1598_v47 = vmax.f32 %v1566_v36, 0.0  ;;  %v1568_v48 = vadd.f32 %v4207_v7, %v1531_v37  ;;  %3057 = vmatprep.subr.bf16.mxu1 %v3425_v41  ;;  %v3426_v54 = vld [vmem:[#allocation11 + $0x28] sm:$0xff]   ;;  %v3427_v62 = vld [vmem:[#allocation11 + $0x20] sm:$0xff]   ;;  %v1538_v15 = vld [vmem:[#allocation2 + $0x78] sm:$0xff] }
 0x239   : > { %3012 = vmatpush3.bf16.msra.mxu0 %v3418_v3  ;;  %v1666_v24 = vadd.f32 %v4213_v17, %v1629_v19  ;;  %v1667_v25 = vadd.f32 %v4213_v17, %v1630_v20  ;;  %v1569_v49 = vadd.f32 %v4207_v7, %v1532_v38  ;;  %v1599_v50 = vmax.f32 %v1567_v39, 0.0  ;;  %v1536_v61 = vld [vmem:[#allocation2 + $0xf0] sm:$0xff]  ;;  %v1537_v11 = vld [vmem:[#allocation2 + $0x8] sm:$0xff]  ;;  %v1551_v23 = vld [vmem:[#allocation2 + $0xa0] sm:$0xff] }
 0x23a   : > { %3013 = vmatprep.subr.bf16.mxu0 %v3419_v4  ;;  %v1668_v55 = vadd.f32 %v4213_v17, %v1631_v42  ;;  %v1669_v56 = vadd.f32 %v4213_v17, %v1632_v43  ;;  %v1670_v57 = vadd.f32 %v4213_v17, %v1633_v44  ;;  %v1671_v58 = vadd.f32 %v4213_v17, %v1634_v46  ;;  %v1540_v26 = vld [vmem:[#allocation2 + $0x58] sm:$0xff] }
 0x23b   : > { %v1698_v29 = vpack.c.bf16 %v1667_v25, %v1666_v24  ;;  %v1600_v59 = vmax.f32 %v1568_v48, 0.0  ;;  %v1601_v60 = vmax.f32 %v1569_v49, 0.0  ;;  %3058 = vmatpush3.bf16.msra.mxu1 %v3425_v41  ;;  %v1570_v63 = vadd.f32 %v4207_v7, %v1533_v51  ;;  %v1539_v25 = vld [vmem:[#allocation2 + $0x38] sm:$0xff]  ;;  %v1541_v49 = vld [vmem:[#allocation2 + $0x40] sm:$0xff] }
 0x23c   : > { %v1571_v0 = vadd.f32 %v4207_v7, %v1534_v52  ;;  %v1572_v1 = vadd.f32 %v4207_v7, %v1535_v53  ;;  %3059 = vmatprep.subr.bf16.mxu1 %v3426_v54  ;;  %v1699_v2 = vpack.c.bf16 %v1669_v56, %v1668_v55  ;;  %v1635_v3 = vmul.f32 %v4211_v10, %v1598_v47  ;;  %v1554_v40 = vld [vmem:[#allocation2 + $0x98] sm:$0xff] }
 0x23d   : > { %3014 = vmatpush3.bf16.msra.mxu0 %v3419_v4  ;;  %3023 = vmatprep.mubr.bf16.mxu0 %v1698_v29  ;;  %v1636_v4 = vmul.f32 %v4211_v10, %v1599_v50  ;;  %v1573_v5 = vadd.f32 %v4207_v7, %v1536_v61  ;;  %v1700_v6 = vpack.c.bf16 %v1671_v58, %v1670_v57  ;;  %v1602_v12 = vmax.f32 %v1570_v63, 0.0  ;;  %v1542_v50 = vld [vmem:[#allocation2 + $0xc8] sm:$0xff]  ;;  %v1543_v57 = vld [vmem:[#allocation2 + $0xe0] sm:$0xff] }
 0x23e   : > { %3015 = vmatprep.subr.bf16.mxu0 %v3420_v16  ;;  %v1637_v8 = vmul.f32 %v4211_v10, %v1600_v59  ;;  %v1638_v9 = vmul.f32 %v4211_v10, %v1601_v60  ;;  %v1603_v13 = vmax.f32 %v1571_v0, 0.0  ;;  %v1604_v14 = vmax.f32 %v1572_v1, 0.0  ;;  %v1544_v60 = vld [vmem:[#allocation2 + $0x90] sm:$0xff] }
 0x23f   : > { %3060 = vmatpush3.bf16.msra.mxu1 %v3426_v54  ;;  %v1673_v18 = vadd.f32 %v4213_v17, %v1636_v4  ;;  %v1605_v19 = vmax.f32 %v1573_v5, 0.0  ;;  %v1574_v20 = vadd.f32 %v4207_v7, %v1537_v11  ;;  %v1575_v24 = vadd.f32 %v4207_v7, %v1538_v15 }
 0x240   : > { %3061 = vmatprep.subr.bf16.mxu1 %v3427_v62  ;;  %v1674_v21 = vadd.f32 %v4213_v17, %v1637_v8  ;;  %v1675_v22 = vadd.f32 %v4213_v17, %v1638_v9  ;;  %v1639_v28 = vmul.f32 %v4211_v10, %v1602_v12  ;;  %v1640_v29 = vmul.f32 %v4211_v10, %v1603_v13 }
 0x241   : > { %3016 = vmatpush3.bf16.msra.mxu0 %v3420_v16  ;;  %v1672_v16 = vadd.f32 %v4213_v17, %v1635_v3  ;;  %v1641_v30 = vmul.f32 %v4211_v10, %v1604_v14  ;;  %v1642_v33 = vmul.f32 %v4211_v10, %v1605_v19  ;;  %v1606_v34 = vmax.f32 %v1574_v20, 0.0 }
 0x242   : > { %3017 = vmatprep.subr.bf16.mxu0 %v3421_v27  ;;  %v1588_v35 = vadd.f32 %v4207_v7, %v1551_v23  ;;  %v1702_v36 = vpack.c.bf16 %v1675_v22, %v1674_v21  ;;  %v1576_v37 = vadd.f32 %v4207_v7, %v1539_v25  ;;  %v1577_v38 = vadd.f32 %v4207_v7, %v1540_v26  ;;  %v1545_v21 = vld [vmem:[#allocation2 + $0x70] sm:$0xff]  ;;  %v1546_v26 = vld [vmem:[#allocation2 + $0xc0] sm:$0xff] }
 0x243   : > { %3062 = vmatpush3.bf16.msra.mxu1 %v3427_v62  ;;  %v1701_v32 = vpack.c.bf16 %v1673_v18, %v1672_v16  ;;  %v1607_v41 = vmax.f32 %v1575_v24, 0.0  ;;  %v1676_v44 = vadd.f32 %v4213_v17, %v1639_v28  ;;  %v1678_v46 = vadd.f32 %v4213_v17, %v1641_v30  ;;  %v1548_v28 = vld [vmem:[#allocation2 + $0xd0] sm:$0xff] }
 0x244   : > { %v1620_v42 = vmax.f32 %v1588_v35, 0.0  ;;  %v1679_v48 = vadd.f32 %v4213_v17, %v1642_v33  ;;  %v1591_v52 = vadd.f32 %v4207_v7, %v1554_v40  ;;  %v1643_v54 = vmul.f32 %v4211_v10, %v1606_v34 }
 0x245   : > { %3018 = vmatpush3.bf16.msra.mxu0 %v3421_v27  ;;  %v1552_v27 = vld [vmem:[#allocation2 + $0xf8] sm:$0xff]  ;;  %v1608_v55 = vmax.f32 %v1576_v37, 0.0  ;;  %v1609_v56 = vmax.f32 %v1577_v38, 0.0  ;;  %v1644_v59 = vmul.f32 %v4211_v10, %v1607_v41  ;;  %v1578_v1 = vadd.f32 %v4207_v7, %v1541_v49 }
 0x246   : > { %3019 = vmatprep.subr.bf16.mxu0 %v3422_v31  ;;  %v1589_v39 = vadd.f32 %v4207_v7, %v1552_v27  ;;  %v1657_v51 = vmul.f32 %v4211_v10, %v1620_v42  ;;  %v1623_v62 = vmax.f32 %v1591_v52, 0.0  ;;  %v1704_v4 = vpack.c.bf16 %v1679_v48, %v1678_v46  ;;  %v1547_v27 = vld [vmem:[#allocation2 + $0xa8] sm:$0xff] }
 0x247   : > { %v1580_v5 = vadd.f32 %v4207_v7, %v1543_v57  ;;  %v1645_v9 = vmul.f32 %v4211_v10, %v1608_v55  ;;  %v1646_v11 = vmul.f32 %v4211_v10, %v1609_v56  ;;  %v1581_v12 = vadd.f32 %v4207_v7, %v1544_v60  ;;  %v1550_v48 = vld [vmem:[#allocation2 + $0x28] sm:$0xff] }
 0x248   : > { %v1621_v47 = vmax.f32 %v1589_v39, 0.0  ;;  %v4268_v61 = vadd.f32 %v4213_v17, %v1657_v51  ;;  %v1680_v15 = vadd.f32 %v4213_v17, %v1643_v54  ;;  %v1681_v16 = vadd.f32 %v4213_v17, %v1644_v59 }
 0x249   : > { %3020 = vmatpush3.bf16.msra.mxu0 %v3422_v31  ;;  %v1553_v31 = vld [vmem:[#allocation2 + $0x20] sm:$0xff]  ;;  %v1610_v18 = vmax.f32 %v1578_v1, 0.0  ;;  %v1612_v20 = vmax.f32 %v1580_v5, 0.0  ;;  %v1682_v23 = vadd.f32 %v4213_v17, %v1645_v9  ;;  %v1683_v24 = vadd.f32 %v4213_v17, %v1646_v11  ;;  %v3429_v9 = vld [vmem:[#allocation11 + $0x10] sm:$0xff]   ;;  %v3431_v11 = vld [vmem:[#allocation11] sm:$0xff]  }
 0x24a   : > { %3021 = vmatprep.subr.bf16.mxu0 %v3423_v45  ;;  %v1590_v43 = vadd.f32 %v4207_v7, %v1553_v31  ;;  %v1658_v58 = vmul.f32 %v4211_v10, %v1621_v47  ;;  %v1613_v25 = vmax.f32 %v1581_v12, 0.0  ;;  %v1582_v30 = vadd.f32 %v4207_v7, %v1545_v21  ;;  %v1549_v47 = vld [vmem:[#allocation2 + $0x10] sm:$0xff] }
 0x24b   : > { %v1647_v31 = vmul.f32 %v4211_v10, %v1610_v18  ;;  %v1649_v33 = vmul.f32 %v4211_v10, %v1612_v20  ;;  %v1583_v34 = vadd.f32 %v4207_v7, %v1546_v26  ;;  %v1706_v35 = vpack.c.bf16 %v1683_v24, %v1682_v23 }
 0x24c   : > { %v1622_v53 = vmax.f32 %v1590_v43, 0.0  ;;  %v4274_v3 = vadd.f32 %v4213_v17, %v1658_v58  ;;  %v1584_v37 = vadd.f32 %v4207_v7, %v1547_v27  ;;  %v1585_v38 = vadd.f32 %v4207_v7, %v1548_v28 }
 0x24d   : > { %3022 = vmatpush3.bf16.msra.mxu0 %v3423_v45  ;;  %v1677_v45 = vadd.f32 %v4213_v17, %v1640_v29  ;;  %v1705_v29 = vpack.c.bf16 %v1681_v16, %v1680_v15  ;;  %v1614_v39 = vmax.f32 %v1582_v30, 0.0  ;;  %v1684_v40 = vadd.f32 %v4213_v17, %v1647_v31  ;;  %v4330_v16 = vld [vmem:[#allocation9 + $0x5] ss:$0 sm:$0xff] }
 0x24e   : > { %v1659_v63 = vmul.f32 %v4211_v10, %v1622_v53  ;;  %v1712_v13 = vpack.c.bf16 %v4274_v3, %v4268_v61  ;;  %v1615_v42 = vmax.f32 %v1583_v34, 0.0  ;;  %v1686_v43 = vadd.f32 %v4213_v17, %v1649_v33  ;;  %v4327_v61 = vld [vmem:[#allocation9 + $0x4] ss:$0 sm:$0xff] }
 0x24f   : > { %v1703_v0 = vpack.c.bf16 %v1677_v45, %v1676_v44  ;;  %v1616_v45 = vmax.f32 %v1584_v37, 0.0  ;;  %v1617_v46 = vmax.f32 %v1585_v38, 0.0  ;;  %v1651_v49 = vmul.f32 %v4211_v10, %v1614_v39 }
 0x250   : > { %3024 = vmatmul.mubr.bf16.vlgmr.msra.gmra.mxu0 %v1699_v2  ;;  %v1579_v2 = vadd.f32 %v4207_v7, %v1542_v50  ;;  %v4279_v8 = vadd.f32 %v4213_v17, %v1659_v63  ;;  %v1652_v51 = vmul.f32 %v4211_v10, %v1615_v42  ;;  %v1586_v52 = vadd.f32 %v4207_v7, %v1549_v47 }
 0x251   : > { %3027 = vmatprep.mubr.bf16.mxu0 %v1700_v6  ;;  %v1660_v6 = vmul.f32 %v4211_v10, %v1623_v62  ;;  %v1587_v53 = vadd.f32 %v4207_v7, %v1550_v48  ;;  %v1653_v55 = vmul.f32 %v4211_v10, %v1616_v45  ;;  %v1654_v56 = vmul.f32 %v4211_v10, %v1617_v46 }
 0x252   : > { %v1611_v19 = vmax.f32 %v1579_v2, 0.0  ;;  %v1688_v57 = vadd.f32 %v4213_v17, %v1651_v49  ;;  %v1689_v58 = vadd.f32 %v4213_v17, %v1652_v51  ;;  %v1618_v59 = vmax.f32 %v1586_v52, 0.0 }
 0x253   : > { %v4287_v14 = vadd.f32 %v4213_v17, %v1660_v6  ;;  %v1619_v60 = vmax.f32 %v1587_v53, 0.0  ;;  %v1690_v62 = vadd.f32 %v4213_v17, %v1653_v55  ;;  %v1691_v63 = vadd.f32 %v4213_v17, %v1654_v56 }
 0x254   : > { %v1655_v7 = vmul.f32 %v4211_v10, %v1618_v59 }
 0x255   : > { %v1713_v22 = vpack.c.bf16 %v4287_v14, %v4279_v8  ;;  %v1656_v1 = vmul.f32 %v4211_v10, %v1619_v60  ;;  %v1710_v2 = vpack.c.bf16 %v1691_v63, %v1690_v62  ;;  %v3428_v8 = vld [vmem:[#allocation11 + $0x18] sm:$0xff]  }
 0x256   : > { %3063 = vmatprep.subr.bf16.mxu1 %v3428_v8 }
 0x257   : > { %v1693_v5 = vadd.f32 %v4213_v17, %v1656_v1  ;;  %3064 = vmatpush3.bf16.msra.mxu1 %v3428_v8 }
 0x258   : > { %3028 = vmatmul.mubr.bf16.gmra.mxu0 %v1701_v32  ;;  %v1648_v32 = vmul.f32 %v4211_v10, %v1611_v19  ;;  %3065 = vmatprep.subr.bf16.mxu1 %v3429_v9 }
 0x259   : > { %3031 = vmatprep.mubr.bf16.mxu0 %v1702_v36  ;;  %v1650_v36 = vmul.f32 %v4211_v10, %v1613_v25  ;;  %v3430_v10 = vld [vmem:[#allocation11 + $0x8] sm:$0xff]  }
 0x25a   : > { %v1685_v41 = vadd.f32 %v4213_v17, %v1648_v32 }
 0x25b   : > { %v1687_v44 = vadd.f32 %v4213_v17, %v1650_v36  ;;  %3066 = vmatpush3.bf16.msra.mxu1 %v3429_v9 }
 0x25c   : > { %v1707_v50 = vpack.c.bf16 %v1685_v41, %v1684_v40  ;;  %3067 = vmatprep.subr.bf16.mxu1 %v3430_v10 }
 0x25d   : > { %v1708_v54 = vpack.c.bf16 %v1687_v44, %v1686_v43 }
 0x25f   : > { %3068 = vmatpush3.bf16.msra.mxu1 %v3430_v10 }
 0x260   : > { %3032 = vmatmul.mubr.bf16.gmra.mxu0 %v1703_v0  ;;  %v1709_v0 = vpack.c.bf16 %v1689_v58, %v1688_v57  ;;  %3069 = vmatprep.subr.bf16.mxu1 %v3431_v11 }
 0x261   : > { %3035 = vmatprep.mubr.bf16.mxu0 %v1704_v4  ;;  %v1692_v4 = vadd.f32 %v4213_v17, %v1655_v7  ;;  %v4324_v17 = vld [vmem:[#allocation9 + $0x3] ss:$0 sm:$0xff] }
 0x263   : > { %v1711_v6 = vpack.c.bf16 %v1693_v5, %v1692_v4  ;;  %3070 = vmatpush3.bf16.msra.mxu1 %v3431_v11 }
 0x268   : > { %3036 = vmatmul.mubr.bf16.gmra.mxu0 %v1705_v29 }
 0x269   : > { %3039 = vmatprep.mubr.bf16.mxu0 %v1706_v35 }
 0x270   : > { %3040 = vmatmul.mubr.bf16.gmra.mxu0 %v1707_v50 }
 0x271   : > { %3043 = vmatprep.mubr.bf16.mxu0 %v1708_v54 }
 0x278   : > { %3044 = vmatmul.mubr.bf16.gmra.mxu0 %v1709_v0 }
 0x279   : > { %3047 = vmatprep.mubr.bf16.mxu0 %v1710_v2 }
 0x280   : > { %3048 = vmatmul.mubr.bf16.gmra.mxu0 %v1711_v6 }
 0x281   : > { %3051 = vmatprep.mubr.bf16.mxu0 %v1712_v13 }
 0x288   : > { %3052 = vmatmul.mubr.bf16.gmra.mxu0 %v1713_v22 }
 0x310   : > { %v3025_v12 = vpop.f32.mrf.mxu0 }
 0x311   : > { %v1826_v14 = vadd.f32 %v3025_v12, %v4324_v17 }
 0x312   : > { %v1817_v3 = vpop.f32.mrf.mxu0 }
 0x313   : > { %v1946_v13 = vmax.f32 %v1826_v14, 0.0  ;;  %v1818_v15 = vadd.f32 %v4324_v17, %v1817_v3 }
 0x314   : > { %v3026_v18 = vpop.f32.mrf.mxu0 }
 0x315   : > { %v1983_v19 = vmul.f32 %v4327_v61, %v1946_v13  ;;  %v1944_v20 = vmax.f32 %v1818_v15, 0.0  ;;  %v1829_v21 = vadd.f32 %v3026_v18, %v4324_v17 }
 0x316   : > { %v1820_v22 = vpop.f32.mrf.mxu0 }
 0x317   : > { %v2020_v23 = vadd.f32 %v4330_v16, %v1983_v19  ;;  %v1981_v24 = vmul.f32 %v4327_v61, %v1944_v20  ;;  %v1947_v25 = vmax.f32 %v1829_v21, 0.0  ;;  %v1821_v26 = vadd.f32 %v4324_v17, %v1820_v22 }
 0x318   : > { %v3029_v27 = vpop.f32.mrf.mxu0 }
 0x319   : > { %2052 = vst [vmem:[%s4105_s2 + $0x10] sm:$0xff] %v2020_v23  ;;  %v1984_v28 = vmul.f32 %v4327_v61, %v1947_v25  ;;  %v1945_v29 = vmax.f32 %v1821_v26, 0.0  ;;  %v1842_v30 = vadd.f32 %v3029_v27, %v4324_v17  ;;  %v2018_v31 = vadd.f32 %v4330_v16, %v1981_v24 }
 0x31a   : > { %v1833_v32 = vpop.f32.mrf.mxu0 }
 0x31b   : > { %v2021_v33 = vadd.f32 %v4330_v16, %v1984_v28  ;;  %v1982_v34 = vmul.f32 %v4327_v61, %v1945_v29  ;;  %v1950_v35 = vmax.f32 %v1842_v30, 0.0  ;;  %v1834_v36 = vadd.f32 %v4324_v17, %v1833_v32  ;;  %2050 = vst [vmem:[%s4105_s2] sm:$0xff] %v2018_v31 }
 0x31c   : > { %v3030_v37 = vpop.f32.mrf.mxu0 }
 0x31d   : > { %2053 = vst [vmem:[%s4105_s2 + $0x18] sm:$0xff] %v2021_v33  ;;  %v1987_v38 = vmul.f32 %v4327_v61, %v1950_v35  ;;  %v1948_v39 = vmax.f32 %v1834_v36, 0.0  ;;  %v1845_v40 = vadd.f32 %v3030_v37, %v4324_v17  ;;  %v2019_v41 = vadd.f32 %v4330_v16, %v1982_v34 }
 0x31e   : > { %v1836_v42 = vpop.f32.mrf.mxu0  ;;  %v2083_v49 = vpack.c.bf16 %v2021_v33, %v2020_v23 }
 0x31f   : > { %v2024_v43 = vadd.f32 %v4330_v16, %v1987_v38  ;;  %v1985_v44 = vmul.f32 %v4327_v61, %v1948_v39  ;;  %v1951_v45 = vmax.f32 %v1845_v40, 0.0  ;;  %v1837_v46 = vadd.f32 %v4324_v17, %v1836_v42  ;;  %2051 = vst [vmem:[%s4105_s2 + $0x8] sm:$0xff] %v2019_v41 }
 0x320   : > { %v3033_v47 = vpop.f32.mrf.mxu0  ;;  %v2082_v48 = vpack.c.bf16 %v2019_v41, %v2018_v31 }
 0x321   : > { %2056 = vst [vmem:[%s4105_s2 + $0x30] sm:$0xff] %v2024_v43  ;;  %v2022_v50 = vadd.f32 %v4330_v16, %v1985_v44  ;;  %v1988_v51 = vmul.f32 %v4327_v61, %v1951_v45  ;;  %v1949_v52 = vmax.f32 %v1837_v46, 0.0  ;;  %v1858_v53 = vadd.f32 %v3033_v47, %v4324_v17 }
 0x322   : > { %3071 = vmatprep.mubr.bf16.mxu1 %v2082_v48  ;;  %v1849_v54 = vpop.f32.mrf.mxu0 }
 0x323   : > { %2054 = vst [vmem:[%s4105_s2 + $0x20] sm:$0xff] %v2022_v50  ;;  %v2025_v55 = vadd.f32 %v4330_v16, %v1988_v51  ;;  %v1986_v56 = vmul.f32 %v4327_v61, %v1949_v52  ;;  %v1954_v57 = vmax.f32 %v1858_v53, 0.0  ;;  %v1850_v58 = vadd.f32 %v4324_v17, %v1849_v54  ;;  %3072 = vmatmul.mubr.bf16.vlgmr.msra.gmra.mxu1 %v2083_v49 }
 0x324   : > { %v3034_v59 = vpop.f32.mrf.mxu0 }
 0x325   : > { %2057 = vst [vmem:[%s4105_s2 + $0x38] sm:$0xff] %v2025_v55  ;;  %v2023_v60 = vadd.f32 %v4330_v16, %v1986_v56  ;;  %v1991_v62 = vmul.f32 %v4327_v61, %v1954_v57  ;;  %v1952_v63 = vmax.f32 %v1850_v58, 0.0  ;;  %v1861_v0 = vadd.f32 %v3034_v59, %v4324_v17 }
 0x326   : > { %v1852_v7 = vpop.f32.mrf.mxu0  ;;  %v2085_v9 = vpack.c.bf16 %v2025_v55, %v2024_v43 }
 0x327   : > { %2055 = vst [vmem:[%s4105_s2 + $0x28] sm:$0xff] %v2023_v60  ;;  %v2028_v1 = vadd.f32 %v4330_v16, %v1991_v62  ;;  %v1989_v2 = vmul.f32 %v4327_v61, %v1952_v63  ;;  %v1955_v4 = vmax.f32 %v1861_v0, 0.0  ;;  %v1853_v5 = vadd.f32 %v4324_v17, %v1852_v7 }
 0x328   : > { %v3037_v6 = vpop.f32.mrf.mxu0  ;;  %v2084_v8 = vpack.c.bf16 %v2023_v60, %v2022_v50 }
 0x329   : > { %2060 = vst [vmem:[%s4105_s2 + $0x50] sm:$0xff] %v2028_v1  ;;  %v2026_v10 = vadd.f32 %v4330_v16, %v1989_v2  ;;  %v1992_v11 = vmul.f32 %v4327_v61, %v1955_v4  ;;  %v1953_v12 = vmax.f32 %v1853_v5, 0.0  ;;  %v1874_v14 = vadd.f32 %v3037_v6, %v4324_v17 }
 0x32a   : > { %3075 = vmatprep.mubr.bf16.mxu1 %v2084_v8  ;;  %v1865_v3 = vpop.f32.mrf.mxu0 }
 0x32b   : > { %2058 = vst [vmem:[%s4105_s2 + $0x40] sm:$0xff] %v2026_v10  ;;  %v2029_v13 = vadd.f32 %v4330_v16, %v1992_v11  ;;  %v1990_v15 = vmul.f32 %v4327_v61, %v1953_v12  ;;  %v1958_v18 = vmax.f32 %v1874_v14, 0.0  ;;  %v1866_v19 = vadd.f32 %v4324_v17, %v1865_v3  ;;  %3076 = vmatmul.mubr.bf16.gmra.mxu1 %v2085_v9 }
 0x32c   : > { %v3038_v20 = vpop.f32.mrf.mxu0 }
 0x32d   : > { %2061 = vst [vmem:[%s4105_s2 + $0x58] sm:$0xff] %v2029_v13  ;;  %v2027_v21 = vadd.f32 %v4330_v16, %v1990_v15  ;;  %v1995_v22 = vmul.f32 %v4327_v61, %v1958_v18  ;;  %v1956_v23 = vmax.f32 %v1866_v19, 0.0  ;;  %v1877_v24 = vadd.f32 %v3038_v20, %v4324_v17 }
 0x32e   : > { %v1868_v25 = vpop.f32.mrf.mxu0  ;;  %v2087_v32 = vpack.c.bf16 %v2029_v13, %v2028_v1 }
 0x32f   : > { %2059 = vst [vmem:[%s4105_s2 + $0x48] sm:$0xff] %v2027_v21  ;;  %v2032_v26 = vadd.f32 %v4330_v16, %v1995_v22  ;;  %v1993_v27 = vmul.f32 %v4327_v61, %v1956_v23  ;;  %v1959_v28 = vmax.f32 %v1877_v24, 0.0  ;;  %v1869_v29 = vadd.f32 %v4324_v17, %v1868_v25 }
 0x330   : > { %v3041_v30 = vpop.f32.mrf.mxu0  ;;  %v2086_v31 = vpack.c.bf16 %v2027_v21, %v2026_v10 }
 0x331   : > { %2064 = vst [vmem:[%s4105_s2 + $0x70] sm:$0xff] %v2032_v26  ;;  %v2030_v33 = vadd.f32 %v4330_v16, %v1993_v27  ;;  %v1996_v34 = vmul.f32 %v4327_v61, %v1959_v28  ;;  %v1957_v35 = vmax.f32 %v1869_v29, 0.0  ;;  %v1890_v36 = vadd.f32 %v3041_v30, %v4324_v17 }
 0x332   : > { %3079 = vmatprep.mubr.bf16.mxu1 %v2086_v31  ;;  %v1881_v37 = vpop.f32.mrf.mxu0 }
 0x333   : > { %2062 = vst [vmem:[%s4105_s2 + $0x60] sm:$0xff] %v2030_v33  ;;  %v2033_v38 = vadd.f32 %v4330_v16, %v1996_v34  ;;  %v1994_v39 = vmul.f32 %v4327_v61, %v1957_v35  ;;  %v1962_v40 = vmax.f32 %v1890_v36, 0.0  ;;  %v1882_v41 = vadd.f32 %v4324_v17, %v1881_v37  ;;  %3080 = vmatmul.mubr.bf16.gmra.mxu1 %v2087_v32 }
 0x334   : > { %v3042_v42 = vpop.f32.mrf.mxu0 }
 0x335   : > { %2065 = vst [vmem:[%s4105_s2 + $0x78] sm:$0xff] %v2033_v38  ;;  %v2031_v43 = vadd.f32 %v4330_v16, %v1994_v39  ;;  %v1999_v44 = vmul.f32 %v4327_v61, %v1962_v40  ;;  %v1960_v45 = vmax.f32 %v1882_v41, 0.0  ;;  %v1893_v46 = vadd.f32 %v3042_v42, %v4324_v17 }
 0x336   : > { %v1884_v47 = vpop.f32.mrf.mxu0  ;;  %v2089_v54 = vpack.c.bf16 %v2033_v38, %v2032_v26 }
 0x337   : > { %2063 = vst [vmem:[%s4105_s2 + $0x68] sm:$0xff] %v2031_v43  ;;  %v2036_v48 = vadd.f32 %v4330_v16, %v1999_v44  ;;  %v1997_v49 = vmul.f32 %v4327_v61, %v1960_v45  ;;  %v1963_v50 = vmax.f32 %v1893_v46, 0.0  ;;  %v1885_v51 = vadd.f32 %v4324_v17, %v1884_v47 }
 0x338   : > { %v3045_v52 = vpop.f32.mrf.mxu0  ;;  %v2088_v53 = vpack.c.bf16 %v2031_v43, %v2030_v33 }
 0x339   : > { %2068 = vst [vmem:[%s4105_s2 + $0x90] sm:$0xff] %v2036_v48  ;;  %v2034_v55 = vadd.f32 %v4330_v16, %v1997_v49  ;;  %v2000_v56 = vmul.f32 %v4327_v61, %v1963_v50  ;;  %v1961_v57 = vmax.f32 %v1885_v51, 0.0  ;;  %v1906_v58 = vadd.f32 %v3045_v52, %v4324_v17 }
 0x33a   : > { %3083 = vmatprep.mubr.bf16.mxu1 %v2088_v53  ;;  %v1897_v59 = vpop.f32.mrf.mxu0 }
 0x33b   : > { %2066 = vst [vmem:[%s4105_s2 + $0x80] sm:$0xff] %v2034_v55  ;;  %v2037_v60 = vadd.f32 %v4330_v16, %v2000_v56  ;;  %v1998_v62 = vmul.f32 %v4327_v61, %v1961_v57  ;;  %v1966_v63 = vmax.f32 %v1906_v58, 0.0  ;;  %v1898_v0 = vadd.f32 %v4324_v17, %v1897_v59  ;;  %3084 = vmatmul.mubr.bf16.gmra.mxu1 %v2089_v54 }
 0x33c   : > { %v3046_v7 = vpop.f32.mrf.mxu0 }
 0x33d   : > { %2069 = vst [vmem:[%s4105_s2 + $0x98] sm:$0xff] %v2037_v60  ;;  %v2035_v1 = vadd.f32 %v4330_v16, %v1998_v62  ;;  %v2003_v2 = vmul.f32 %v4327_v61, %v1966_v63  ;;  %v1964_v4 = vmax.f32 %v1898_v0, 0.0  ;;  %v1909_v5 = vadd.f32 %v3046_v7, %v4324_v17 }
 0x33e   : > { %v1900_v6 = vpop.f32.mrf.mxu0  ;;  %v2091_v3 = vpack.c.bf16 %v2037_v60, %v2036_v48 }
 0x33f   : > { %2067 = vst [vmem:[%s4105_s2 + $0x88] sm:$0xff] %v2035_v1  ;;  %v2040_v8 = vadd.f32 %v4330_v16, %v2003_v2  ;;  %v2001_v9 = vmul.f32 %v4327_v61, %v1964_v4  ;;  %v1967_v10 = vmax.f32 %v1909_v5, 0.0  ;;  %v1901_v11 = vadd.f32 %v4324_v17, %v1900_v6  ;;  %v4458_v2 = vld [vmem:[#allocation12] ss:$0 sm:$0xff] }
 0x340   : > { %v3049_v12 = vpop.f32.mrf.mxu0  ;;  %v2090_v14 = vpack.c.bf16 %v2035_v1, %v2034_v55 }
 0x341   : > { %2072 = vst [vmem:[%s4105_s2 + $0xb0] sm:$0xff] %v2040_v8  ;;  %v2038_v13 = vadd.f32 %v4330_v16, %v2001_v9  ;;  %v2004_v15 = vmul.f32 %v4327_v61, %v1967_v10  ;;  %v1965_v18 = vmax.f32 %v1901_v11, 0.0  ;;  %v1922_v19 = vadd.f32 %v3049_v12, %v4324_v17 }
 0x342   : > { %3087 = vmatprep.mubr.bf16.mxu1 %v2090_v14  ;;  %v1913_v20 = vpop.f32.mrf.mxu0 }
 0x343   : > { %2070 = vst [vmem:[%s4105_s2 + $0xa0] sm:$0xff] %v2038_v13  ;;  %v2041_v21 = vadd.f32 %v4330_v16, %v2004_v15  ;;  %v2002_v22 = vmul.f32 %v4327_v61, %v1965_v18  ;;  %v1970_v23 = vmax.f32 %v1922_v19, 0.0  ;;  %v1914_v24 = vadd.f32 %v4324_v17, %v1913_v20  ;;  %3088 = vmatmul.mubr.bf16.gmra.mxu1 %v2091_v3 }
 0x344   : > { %v3050_v25 = vpop.f32.mrf.mxu0 }
 0x345   : > { %2073 = vst [vmem:[%s4105_s2 + $0xb8] sm:$0xff] %v2041_v21  ;;  %v2039_v26 = vadd.f32 %v4330_v16, %v2002_v22  ;;  %v2007_v27 = vmul.f32 %v4327_v61, %v1970_v23  ;;  %v1968_v28 = vmax.f32 %v1914_v24, 0.0  ;;  %v1925_v29 = vadd.f32 %v3050_v25, %v4324_v17 }
 0x346   : > { %v1916_v30 = vpop.f32.mrf.mxu0  ;;  %v2093_v37 = vpack.c.bf16 %v2041_v21, %v2040_v8 }
 0x347   : > { %2071 = vst [vmem:[%s4105_s2 + $0xa8] sm:$0xff] %v2039_v26  ;;  %v2044_v31 = vadd.f32 %v4330_v16, %v2007_v27  ;;  %v2005_v32 = vmul.f32 %v4327_v61, %v1968_v28  ;;  %v1971_v33 = vmax.f32 %v1925_v29, 0.0  ;;  %v1917_v34 = vadd.f32 %v4324_v17, %v1916_v30 }
 0x348   : > { %v3053_v35 = vpop.f32.mrf.mxu0  ;;  %v2092_v36 = vpack.c.bf16 %v2039_v26, %v2038_v13 }
 0x349   : > { %2076 = vst [vmem:[%s4105_s2 + $0xd0] sm:$0xff] %v2044_v31  ;;  %v2042_v38 = vadd.f32 %v4330_v16, %v2005_v32  ;;  %v2008_v39 = vmul.f32 %v4327_v61, %v1971_v33  ;;  %v1969_v40 = vmax.f32 %v1917_v34, 0.0  ;;  %v1938_v41 = vadd.f32 %v3053_v35, %v4324_v17 }
 0x34a   : > { %3091 = vmatprep.mubr.bf16.mxu1 %v2092_v36  ;;  %v1929_v42 = vpop.f32.mrf.mxu0 }
 0x34b   : > { %2074 = vst [vmem:[%s4105_s2 + $0xc0] sm:$0xff] %v2042_v38  ;;  %v2045_v43 = vadd.f32 %v4330_v16, %v2008_v39  ;;  %v2006_v44 = vmul.f32 %v4327_v61, %v1969_v40  ;;  %v1974_v45 = vmax.f32 %v1938_v41, 0.0  ;;  %v1930_v46 = vadd.f32 %v4324_v17, %v1929_v42  ;;  %3092 = vmatmul.mubr.bf16.gmra.mxu1 %v2093_v37 }
 0x34c   : > { %v3054_v47 = vpop.f32.mrf.mxu0 }
 0x34d   : > { %2077 = vst [vmem:[%s4105_s2 + $0xd8] sm:$0xff] %v2045_v43  ;;  %v2043_v48 = vadd.f32 %v4330_v16, %v2006_v44  ;;  %v2011_v49 = vmul.f32 %v4327_v61, %v1974_v45  ;;  %v1972_v50 = vmax.f32 %v1930_v46, 0.0  ;;  %v1941_v51 = vadd.f32 %v3054_v47, %v4324_v17 }
 0x34e   : > { %v1932_v52 = vpop.f32.mrf.mxu0  ;;  %v2095_v62 = vpack.c.bf16 %v2045_v43, %v2044_v31 }
 0x34f   : > { %2075 = vst [vmem:[%s4105_s2 + $0xc8] sm:$0xff] %v2043_v48  ;;  %v2048_v53 = vadd.f32 %v4330_v16, %v2011_v49  ;;  %v2009_v54 = vmul.f32 %v4327_v61, %v1972_v50  ;;  %v1975_v55 = vmax.f32 %v1941_v51, 0.0  ;;  %v1933_v56 = vadd.f32 %v4324_v17, %v1932_v52 }
 0x350   : > { %v2094_v57 = vpack.c.bf16 %v2043_v48, %v2042_v38 }
 0x351   : > { %2080 = vst [vmem:[%s4105_s2 + $0xf0] sm:$0xff] %v2048_v53  ;;  %v2046_v58 = vadd.f32 %v4330_v16, %v2009_v54  ;;  %v2012_v59 = vmul.f32 %v4327_v61, %v1975_v55  ;;  %v1973_v60 = vmax.f32 %v1933_v56, 0.0 }
 0x352   : > { %3095 = vmatprep.mubr.bf16.mxu1 %v2094_v57 }
 0x353   : > { %2078 = vst [vmem:[%s4105_s2 + $0xe0] sm:$0xff] %v2046_v58  ;;  %v2049_v63 = vadd.f32 %v4330_v16, %v2012_v59  ;;  %v2010_v0 = vmul.f32 %v4327_v61, %v1973_v60  ;;  %3096 = vmatmul.mubr.bf16.gmra.mxu1 %v2095_v62 }
 0x355   : > { %2081 = vst [vmem:[%s4105_s2 + $0xf8] sm:$0xff] %v2049_v63  ;;  %v2047_v17 = vadd.f32 %v4330_v16, %v2010_v0  ;;  %v2097_v1 = vpack.c.bf16 %v2049_v63, %v2048_v53 }
 0x357   : > { %2079 = vst [vmem:[%s4105_s2 + $0xe8] sm:$0xff] %v2047_v17  ;;  %v2096_v7 = vpack.c.bf16 %v2047_v17, %v2046_v58 }
 0x359   : > { %3099 = vmatprep.mubr.bf16.mxu1 %v2096_v7 }
 0x35b   : > { %3100 = vmatmul.mubr.bf16.gmra.mxu1 %v2097_v1 }
 0x3e3   : > { %v3073_v4 = vpop.f32.mrf.mxu1 }
 0x3e4   : > { %v2212_v5 = vadd.f32 %v3073_v4, %v4458_v2 }
 0x3e5   : > { %v2203_v6 = vpop.f32.mrf.mxu1 }
 0x3e6   : > { %2332 = vst [vmem:[%s4107_s20 + $0x10] sm:$0xff] %v2212_v5  ;;  %v2204_v61 = vadd.f32 %v4458_v2, %v2203_v6 }
 0x3e7   : > { %v3074_v8 = vpop.f32.mrf.mxu1 }
 0x3e8   : > { %2330 = vst [vmem:[%s4107_s20] sm:$0xff] %v2204_v61  ;;  %v2215_v16 = vadd.f32 %v3074_v8, %v4458_v2 }
 0x3e9   : > { %v2206_v9 = vpop.f32.mrf.mxu1 }
 0x3ea   : > { %2333 = vst [vmem:[%s4107_s20 + $0x18] sm:$0xff] %v2215_v16  ;;  %v2207_v10 = vadd.f32 %v4458_v2, %v2206_v9 }
 0x3eb   : > { %v3077_v11 = vpop.f32.mrf.mxu1 }
 0x3ec   : > { %2331 = vst [vmem:[%s4107_s20 + $0x8] sm:$0xff] %v2207_v10  ;;  %v2228_v12 = vadd.f32 %v3077_v11, %v4458_v2 }
 0x3ed   : > { %v2219_v14 = vpop.f32.mrf.mxu1 }
 0x3ee   : > { %2336 = vst [vmem:[%s4107_s20 + $0x30] sm:$0xff] %v2228_v12  ;;  %v2220_v3 = vadd.f32 %v4458_v2, %v2219_v14 }
 0x3ef   : > { %v3078_v13 = vpop.f32.mrf.mxu1 }
 0x3f0   : > { %2334 = vst [vmem:[%s4107_s20 + $0x20] sm:$0xff] %v2220_v3  ;;  %v2231_v15 = vadd.f32 %v3078_v13, %v4458_v2 }
 0x3f1   : > { %v2222_v18 = vpop.f32.mrf.mxu1 }
 0x3f2   : > { %2337 = vst [vmem:[%s4107_s20 + $0x38] sm:$0xff] %v2231_v15  ;;  %v2223_v19 = vadd.f32 %v4458_v2, %v2222_v18 }
 0x3f3   : > { %v3081_v20 = vpop.f32.mrf.mxu1 }
 0x3f4   : > { %2335 = vst [vmem:[%s4107_s20 + $0x28] sm:$0xff] %v2223_v19  ;;  %v2244_v21 = vadd.f32 %v3081_v20, %v4458_v2 }
 0x3f5   : > { %v2235_v22 = vpop.f32.mrf.mxu1 }
 0x3f6   : > { %2340 = vst [vmem:[%s4107_s20 + $0x50] sm:$0xff] %v2244_v21  ;;  %v2236_v23 = vadd.f32 %v4458_v2, %v2235_v22 }
 0x3f7   : > { %v3082_v24 = vpop.f32.mrf.mxu1 }
 0x3f8   : > { %2338 = vst [vmem:[%s4107_s20 + $0x40] sm:$0xff] %v2236_v23  ;;  %v2247_v25 = vadd.f32 %v3082_v24, %v4458_v2 }
 0x3f9   : > { %v2238_v26 = vpop.f32.mrf.mxu1 }
 0x3fa   : > { %2341 = vst [vmem:[%s4107_s20 + $0x58] sm:$0xff] %v2247_v25  ;;  %v2239_v27 = vadd.f32 %v4458_v2, %v2238_v26 }
 0x3fb   : > { %v3085_v28 = vpop.f32.mrf.mxu1 }
 0x3fc   : > { %2339 = vst [vmem:[%s4107_s20 + $0x48] sm:$0xff] %v2239_v27  ;;  %v2260_v29 = vadd.f32 %v3085_v28, %v4458_v2 }
 0x3fd   : > { %v2251_v30 = vpop.f32.mrf.mxu1 }
 0x3fe   : > { %2344 = vst [vmem:[%s4107_s20 + $0x70] sm:$0xff] %v2260_v29  ;;  %v2252_v31 = vadd.f32 %v4458_v2, %v2251_v30 }
 0x3ff   : > { %v3086_v32 = vpop.f32.mrf.mxu1 }
 0x400   : > { %2342 = vst [vmem:[%s4107_s20 + $0x60] sm:$0xff] %v2252_v31  ;;  %v2263_v33 = vadd.f32 %v3086_v32, %v4458_v2 }
 0x401   : > { %v2254_v34 = vpop.f32.mrf.mxu1 }
 0x402   : > { %2345 = vst [vmem:[%s4107_s20 + $0x78] sm:$0xff] %v2263_v33  ;;  %v2255_v35 = vadd.f32 %v4458_v2, %v2254_v34 }
 0x403   : > { %v3089_v36 = vpop.f32.mrf.mxu1 }
 0x404   : > { %2343 = vst [vmem:[%s4107_s20 + $0x68] sm:$0xff] %v2255_v35  ;;  %v2276_v37 = vadd.f32 %v3089_v36, %v4458_v2 }
 0x405   : > { %v2267_v38 = vpop.f32.mrf.mxu1 }
 0x406   : > { %2348 = vst [vmem:[%s4107_s20 + $0x90] sm:$0xff] %v2276_v37  ;;  %v2268_v39 = vadd.f32 %v4458_v2, %v2267_v38 }
 0x407   : > { %v3090_v40 = vpop.f32.mrf.mxu1 }
 0x408   : > { %2346 = vst [vmem:[%s4107_s20 + $0x80] sm:$0xff] %v2268_v39  ;;  %v2279_v41 = vadd.f32 %v3090_v40, %v4458_v2 }
 0x409   : > { %v2270_v42 = vpop.f32.mrf.mxu1 }
 0x40a   : > { %2349 = vst [vmem:[%s4107_s20 + $0x98] sm:$0xff] %v2279_v41  ;;  %v2271_v43 = vadd.f32 %v4458_v2, %v2270_v42 }
 0x40b   : > { %v3093_v44 = vpop.f32.mrf.mxu1 }
 0x40c   : > { %2347 = vst [vmem:[%s4107_s20 + $0x88] sm:$0xff] %v2271_v43  ;;  %v2292_v45 = vadd.f32 %v3093_v44, %v4458_v2 }
 0x40d   : > { %v2283_v46 = vpop.f32.mrf.mxu1 }
 0x40e   : > { %2352 = vst [vmem:[%s4107_s20 + $0xb0] sm:$0xff] %v2292_v45  ;;  %v2284_v47 = vadd.f32 %v4458_v2, %v2283_v46 }
 0x40f   : > { %v3094_v48 = vpop.f32.mrf.mxu1 }
 0x410   : > { %2350 = vst [vmem:[%s4107_s20 + $0xa0] sm:$0xff] %v2284_v47  ;;  %v2295_v49 = vadd.f32 %v3094_v48, %v4458_v2 }
 0x411   : > { %v2286_v50 = vpop.f32.mrf.mxu1 }
 0x412   : > { %2353 = vst [vmem:[%s4107_s20 + $0xb8] sm:$0xff] %v2295_v49  ;;  %v2287_v51 = vadd.f32 %v4458_v2, %v2286_v50 }
 0x413   : > { %v3097_v52 = vpop.f32.mrf.mxu1 }
 0x414   : > { %2351 = vst [vmem:[%s4107_s20 + $0xa8] sm:$0xff] %v2287_v51  ;;  %v2308_v53 = vadd.f32 %v3097_v52, %v4458_v2 }
 0x415   : > { %v2299_v54 = vpop.f32.mrf.mxu1 }
 0x416   : > { %2356 = vst [vmem:[%s4107_s20 + $0xd0] sm:$0xff] %v2308_v53  ;;  %v2300_v55 = vadd.f32 %v4458_v2, %v2299_v54 }
 0x417   : > { %v3098_v56 = vpop.f32.mrf.mxu1 }
 0x418   : > { %2354 = vst [vmem:[%s4107_s20 + $0xc0] sm:$0xff] %v2300_v55  ;;  %v2311_v57 = vadd.f32 %v3098_v56, %v4458_v2 }
 0x419   : > { %v2302_v58 = vpop.f32.mrf.mxu1 }
 0x41a   : > { %2357 = vst [vmem:[%s4107_s20 + $0xd8] sm:$0xff] %v2311_v57  ;;  %v2303_v59 = vadd.f32 %v4458_v2, %v2302_v58 }
 0x41b   : > { %v3101_v60 = vpop.f32.mrf.mxu1 }
 0x41c   : > { %2355 = vst [vmem:[%s4107_s20 + $0xc8] sm:$0xff] %v2303_v59  ;;  %v2324_v62 = vadd.f32 %v3101_v60, %v4458_v2 }
 0x41d   : > { %v2315_v63 = vpop.f32.mrf.mxu1 }
 0x41e   : > { %2360 = vst [vmem:[%s4107_s20 + $0xf0] sm:$0xff] %v2324_v62  ;;  %v2316_v0 = vadd.f32 %v4458_v2, %v2315_v63 }
 0x41f   : > { %v3102_v17 = vpop.f32.mrf.mxu1 }
 0x420   : > { %2358 = vst [vmem:[%s4107_s20 + $0xe0] sm:$0xff] %v2316_v0  ;;  %v2327_v7 = vadd.f32 %v3102_v17, %v4458_v2 }
 0x421   : > { %v2318_v1 = vpop.f32.mrf.mxu1 }
 0x422   : > { %2361 = vst [vmem:[%s4107_s20 + $0xf8] sm:$0xff] %v2327_v7  ;;  %v2319_v4 = vadd.f32 %v4458_v2, %v2318_v1 }
 0x424   : > { %2359 = vst [vmem:[%s4107_s20 + $0xe8] sm:$0xff] %v2319_v4 }
 0x425 PF: > { %s4728_s15 = sld [smem:[#allocation27_spill]]  ;;  %s2381_s10 = sshll.u32 %s4105_s2, 4  ;;  %s4533_s10 = int_to_ptr.vmem [resolvable:$true] %s2381_s10 }
 0x426   : > { %s4730_s30 = sld [smem:[#allocation41_spill]]  ;;  %s2363_s0 = scalar_lea.sflag [#allocation5], %s4102_s25 }
 0x427   : > { %s3592_s6 = scalar_lea.vmem %s4533_s10, 4096  ;;  %s3796_s21 = smov [#allocation14]  }
 0x428   : > { %p3593_p7 = scmp.ne.s32.totalorder %s4533_s10, %s3592_s6  ;;  %s3596_s19 = sshll.u32 %s3796_s21, 4  ;;  %s3597_s19 = int_to_ptr.vmem [resolvable:$false] %s3596_s19 }
 0x429   : > { %s3598_s11 = scalar_lea.vmem %s3597_s19, 8192  ;;  %p3599_p0 = scmp.lt.s32.totalorder %s4533_s10, %s3597_s19 }
 0x42a   : > { %p3594_p9 = pnand %p3593_p7, %p3930_p8  ;;  %p3600_p1 = scmp.lt.s32.totalorder %s3598_s11, %s3592_s6 }
 0x42b   : > { %s2733_s27 = sshll.u32 %s4728_s15, 12 }
 0x42c   : > { %s4731_s3 = smov %s4730_s30  ;;  %s4530_s13 = scalar_lea.hbm %s4730_s30, %s2733_s27 }
 0x42d   : > { %p3595_p12 = pneg %p3594_p9  ;;  %p3601_p13 = por %p3600_p1, %p3599_p0 }
 0x42f   : > { %p3602_p3 = pnand %p3601_p13, %p3595_p12 }
 0x431   : > { %3605 = shalt.err (!%p3602_p3)
}
 0x432   : > { %s3606_s17 = scalar_lea.hbm %s4530_s13, 4096  ;;  %s3610_s18 = scalar_lea.hbm %s4731_s3, 16384 }
 0x433   : > { %p3607_p4 = scmp.ne.s32.totalorder %s4530_s13, %s3606_s17  ;;  %p3611_p11 = scmp.lt.s32.totalorder %s4530_s13, %s4731_s3 }
 0x434   : > { %p3612_p6 = scmp.lt.s32.totalorder %s3610_s18, %s3606_s17 }
 0x435   : > { %p3608_p2 = pnand %p3607_p4, %p3930_p8 }
 0x436   : > { %p3613_p10 = por %p3612_p6, %p3611_p11 }
 0x437   : > { %p3609_p5 = pneg %p3608_p2 }
 0x439   : > { %p3614_p7 = pnand %p3613_p10, %p3609_p5 }
 0x43b   : > { %3617 = shalt.err (!%p3614_p7)
}
 0x43c   : > { %s3797_s30 = smov 128   ;;  %s3798_s6 = smov 8  }
 0x43d   : > { %3123 = dma.vmem_to_hbm [thread:$0]  (%p3930_p8), %s4533_s10, 4096, %s4530_s13, %s2363_s0, %s3797_s30, %s3797_s30, %s3798_s6  }
 0x43e   : > { %s4732_s11 = sld [smem:[#allocation42_spill]]  ;;  %s2397_s16 = sshll.u32 %s4107_s20, 4  ;;  %s4569_s16 = int_to_ptr.vmem [resolvable:$true] %s2397_s16 }
 0x43f   : > { %s2368_s18 = scalar_lea.sflag [#allocation16], %s4102_s25  ;;  %s3618_s22 = scalar_lea.vmem %s4569_s16, 4096 }
 0x440   : > { %p3619_p9 = scmp.ne.s32.totalorder %s4569_s16, %s3618_s22  ;;  %s3799_s24 = smov [#allocation15]  }
 0x441   : > { %s3622_s13 = sshll.u32 %s3799_s24, 4  ;;  %s3623_s13 = int_to_ptr.vmem [resolvable:$false] %s3622_s13 }
 0x442   : > { %p3620_p12 = pnand %p3619_p9, %p3930_p8  ;;  %s3624_s15 = scalar_lea.vmem %s3623_s13, 8192 }
 0x443   : > { %p3625_p1 = scmp.lt.s32.totalorder %s4569_s16, %s3623_s13  ;;  %p3626_p13 = scmp.lt.s32.totalorder %s3624_s15, %s3618_s22 }
 0x444   : > { %s4733_s17 = smov %s4732_s11  ;;  %s4566_s2 = scalar_lea.hbm %s4732_s11, %s2733_s27 }
 0x445   : > { %p3621_p0 = pneg %p3620_p12  ;;  %p3627_p3 = por %p3626_p13, %p3625_p1 }
 0x447   : > { %p3628_p4 = pnand %p3627_p3, %p3621_p0 }
 0x449   : > { %3631 = shalt.err (!%p3628_p4)
}
 0x44a   : > { %s3632_s20 = scalar_lea.hbm %s4566_s2, 4096  ;;  %s3636_s10 = scalar_lea.hbm %s4733_s17, 16384 }
 0x44b   : > { %p3633_p2 = scmp.ne.s32.totalorder %s4566_s2, %s3632_s20  ;;  %p3637_p6 = scmp.lt.s32.totalorder %s4566_s2, %s4733_s17 }
 0x44c   : > { %p3638_p10 = scmp.lt.s32.totalorder %s3636_s10, %s3632_s20 }
 0x44d   : > { %p3634_p5 = pnand %p3633_p2, %p3930_p8 }
 0x44e   : > { %p3639_p7 = por %p3638_p10, %p3637_p6 }
 0x44f   : > { %p3635_p11 = pneg %p3634_p5 }
 0x451   : > { %p3640_p9 = pnand %p3639_p7, %p3635_p11 }
 0x453   : > { %3643 = shalt.err (!%p3640_p9)
}
 0x454   : > { %3124 = dma.vmem_to_hbm [thread:$0]  (%p3930_p8), %s4569_s16, 4096, %s4566_s2, %s2368_s18, %s3797_s30, %s3797_s30, %s3798_s6  }
 0x455 PF: > { %s4734_s19 = sld [smem:[#allocation24_spill]]  ;;  %p3163_p12 = scmp.ge.s32.totalorder %s3782_s14, 2 }
 0x456   : > { %s4735_s11 = sld [smem:[#allocation33_spill]] }
 0x45b   : > { %s2412_s22 = sand.u32 1, %s4734_s19  }
 0x45c   : > { %p4736_p0 = scmp.ne.s32.totalorder %s4735_s11, 0  ;;  %s2413_s24 = scalar_lea.sflag [#allocation5], %s2412_s22 }
 0x45e   : > { %p3148_p1 = pnand %p3163_p12, %p4736_p0 }
 0x460   : > { %p3149_p13 = pneg %p3148_p1 }
 0x462   : > { %3721 = dma.done.wait (%p3149_p13), %s2413_s24, 4096  }
 0x463   : > { %3723 = vsyncadd (%p3149_p13), %s2413_s24, 4294963200  ;;  %s2422_s13 = scalar_lea.sflag [#allocation16], %s2412_s22 }
 0x464   : > { %3725 = dma.done.wait (%p3149_p13), %s2422_s13, 4096  }
 0x465   : > { %3727 = vsyncadd (%p3149_p13), %s2422_s13, 4294963200  ;;  %s32_s14 = sadd.s32 1, %s3782_s14   ;;  %s4738_s24 = sld [smem:[#allocation25_spill]] }
 0x466   : > { %p4600_p3 = scmp.ge.s32.totalorder %s32_s14, 10   ;;  %s4739_s11 = sld [smem:[#allocation28_spill]] }
 0x467   : > { %s4740_s6 = sld [smem:[#allocation34_spill]]  ;;  %s4742_s25 = smov %s3738_s26 }
 0x468   : > { %s4741_s13 = sld [smem:[#allocation35_spill]]  ;;  %s4743_s26 = smov %s4021_s4 }
 0x469   : > { %s4744_s27 = smov %s3746_s28  ;;  %s4745_s28 = smov %s3750_s29 }
 0x46a   : > { %s4746_s29 = smov %s4050_s7  ;;  %s4747_s30 = smov %s3758_s8 }
 0x46b   : > { %s4748_s8 = smov %s3762_s9  ;;  %s4749_s9 = smov %s4024_s5 }
 0x46c   : > { %s4750_s10 = smov %s3774_s12  ;;  %31 = sbr.rel (!%p4600_p3) target bundleno = 24 (0x18), region = 143 }
 0x46d   : > { %s4751_s12 = smov %s4740_s6 }
 0x471   :  { %2427 = vsyncpa [#allocation4], 1 }
 0x472   :  { %2429 = vsyncpa [#allocation4 + $0x1], 1 }
 0x473   :  { %2430 = vsyncpa [#allocation7], 1 }
 0x474   :  { %2432 = vsyncpa [#allocation7 + $0x1], 1 }
 0x475   :  { %2433 = vsyncpa [#allocation10], 1 }
 0x476   :  { %2434 = vsyncpa [#allocation13], 1 }
 0x477   :  { %2435 = vsyncpa [#allocation5], 1 }
 0x478   :  { %2437 = vsyncpa [#allocation5 + $0x1], 1 }
 0x479   :  { %2438 = vsyncpa [#allocation16], 1 }
 0x47a   :  { %2440 = vsyncpa [#allocation16 + $0x1], 1 }

</bundles_post_ra>
